<compile_context>
chip_gen: v7x
topology: tpu7x:2x2x1
jax: 0.10.0
libtpu: 0.0.40
codegen_flags: <defaults>
</compile_context>

<pallas_src>
import functools

import numpy as np
import jax
import jax.numpy as jnp
from jax.experimental import pallas as pl
from jax.experimental.pallas import tpu as pltpu

EPS = 1e-5


def _residual_kernel(x_ref, mask_ref, wc_ref, w2_ref, b3_ref,
                     g1_ref, be1_ref, g2_ref, be2_ref, out_ref,
                     *, N, H, W, Cmid):
    HW = H * W
    M = N * HW
    inv_m = 1.0 / float(M)
    taps = [(dh, dw) for dh in (-1, 0, 1) for dw in (-1, 0, 1)]

    def im2col(z):
        # z: (C, M), M flattened as (n, h, w).  Returns (9*C, M) where row
        # t*C + c holds channel c shifted by tap (dh, dw) with zero "SAME"
        # padding (mask kills both the halo and any roll wraparound).
        pieces = []
        for t, (dh, dw) in enumerate(taps):
            if dh == 0 and dw == 0:
                pieces.append(z)                       # center tap: no shift/mask
                continue
            d = dh * W + dw
            # shifted[:, p] = z[:, (p + d) % M]   (wraparound is masked out)
            shifted = pltpu.roll(z, (-d) % M, axis=1)
            pieces.append(shifted * mask_ref[t])
        return jnp.concatenate(pieces, axis=0)

    # Gather the batch into one lane-dense (C, M) slab (lane-aligned concat).
    x2d = jnp.concatenate([x_ref[n] for n in range(N)], axis=1)

    # conv1 (3x3, pad=1) and the 1x1 shortcut fused into ONE wide-K MXU matmul.
    comb = jnp.dot(wc_ref[...], im2col(x2d),
                   preferred_element_type=jnp.float32)        # (2*Cmid, M)
    acc1 = comb[:Cmid, :]                                     # conv1 pre-BN
    shortcut = comb[Cmid:, :] + b3_ref[...]                   # 1x1 conv + bias

    # bn1 (training-mode batch stats, single pass) + ReLU.
    # conv1's bias is omitted: a per-channel constant right before BN is
    # cancelled exactly by the mean subtraction.
    s1 = jnp.sum(acc1, axis=1, keepdims=True)
    q1 = jnp.sum(acc1 * acc1, axis=1, keepdims=True)
    mean1 = s1 * inv_m
    var1 = q1 * inv_m - mean1 * mean1
    scale1 = jax.lax.rsqrt(var1 + EPS) * g1_ref[...]
    y = jnp.maximum((acc1 - mean1) * scale1 + be1_ref[...], 0.0)   # (Cmid, M)

    # conv2 (3x3, pad=1): halo handled by the masks, no padded VMEM scratch.
    acc2 = jnp.dot(w2_ref[...], im2col(y),
                   preferred_element_type=jnp.float32)        # (Cmid, M)

    # bn2 (conv2 bias omitted for the same reason as conv1's).
    s2 = jnp.sum(acc2, axis=1, keepdims=True)
    q2 = jnp.sum(acc2 * acc2, axis=1, keepdims=True)
    mean2 = s2 * inv_m
    var2 = q2 * inv_m - mean2 * mean2
    scale2 = jax.lax.rsqrt(var2 + EPS) * g2_ref[...]
    y2 = (acc2 - mean2) * scale2 + be2_ref[...]

    # Residual add + final ReLU; lane-dense (Cmid, H*W) stores per sample.
    out2d = jnp.maximum(y2 + shortcut, 0.0)
    for n in range(N):
        out_ref[n] = out2d[:, n * HW:(n + 1) * HW]


def residual_forward(x_nchw, params):
    """Residual block forward.  x: (N, Cin, H, W) f32 -> (N, Cmid, H, W) f32."""
    N, Cin, H, W = x_nchw.shape
    Cmid = params["w1"].shape[-1]
    HW, M = H * W, N * H * W
    # TODO(synk): layout assumes H*W % 128 == 0 and Cmid % 8 == 0 (true for all
    #             WCDMARESCNN blocks); general shapes need slab padding.
    assert HW % 128 == 0 and Cmid % 8 == 0 and W + 1 < M

    # Channel-pad the input to a sublane multiple (no-op when Cin % 8 == 0).
    cpad = -Cin % 8
    x3 = x_nchw.reshape(N, Cin, HW)                 # free reshape, no transpose
    if cpad:
        x3 = jnp.pad(x3, ((0, 0), (0, cpad), (0, 0)))
    cin_p = Cin + cpad

    # conv1 weights (HWIO) with the 1x1 shortcut folded in as extra output
    # channels; column k = (kh*3 + kw)*cin_p + cin matches the im2col order.
    w1p = jnp.zeros((3, 3, cin_p, Cmid), jnp.float32).at[:, :, :Cin, :].set(params["w1"])
    w1_mat = jnp.transpose(w1p, (3, 0, 1, 2)).reshape(Cmid, 9 * cin_p)
    w3_mat = jnp.zeros((Cmid, 3, 3, cin_p), jnp.float32)
    w3_mat = w3_mat.at[:, 1, 1, :Cin].set(params["w3"].T).reshape(Cmid, 9 * cin_p)
    wc = jnp.concatenate([w1_mat, w3_mat], axis=0)                  # (2*Cmid, 9*cin_p)
    w2_mat = jnp.transpose(params["w2"], (3, 0, 1, 2)).reshape(Cmid, 9 * Cmid)

    # Static per-tap halo masks over the flattened (n, h, w) axis.
    hw = np.arange(HW)
    hh, ww = hw // W, hw % W
    m9 = np.stack([((hh + dh >= 0) & (hh + dh < H) & (ww + dw >= 0) & (ww + dw < W))
                   for dh in (-1, 0, 1) for dw in (-1, 0, 1)]).astype(np.float32)
    masks = jnp.asarray(np.tile(m9, (1, N)).reshape(9, 1, M))

    col = lambda v: jnp.asarray(v, jnp.float32).reshape(-1, 1)
    vmem = pl.BlockSpec(memory_space=pltpu.MemorySpace.VMEM)
    kernel = functools.partial(_residual_kernel, N=N, H=H, W=W, Cmid=Cmid)

    # Everything fits comfortably in VMEM at these shapes -> one un-gridded call.
    # TODO(synk): at production sizes, tile over (N, H) with a two-pass /
    #             partial-sum BatchNorm and dimension_semantics=("parallel",...)
    #             so the working set fits v7x's 64 MiB VMEM and uses both TCs.
    out = pl.pallas_call(
        kernel,
        out_shape=jax.ShapeDtypeStruct((N, Cmid, HW), jnp.float32),
        in_specs=[vmem] * 9,
        out_specs=vmem,
    )(x3, masks, wc, w2_mat, col(params["b3"]),
      col(params["g1"]), col(params["be1"]),
      col(params["g2"]), col(params["be2"]))

    return out.reshape(N, Cmid, H, W)               # free reshape -> NCHW


def reference_forward(x_nchw, p):
    """Pure-JAX reference with the same (training-mode BN) semantics."""
    x = jnp.transpose(x_nchw, (0, 2, 3, 1))

    def conv3x3(z, w, b):
        dn = jax.lax.conv_dimension_numbers(z.shape, w.shape,
                                            ("NHWC", "HWIO", "NHWC"))
        return jax.lax.conv_general_dilated(z, w, (1, 1), "SAME",
                                            dimension_numbers=dn) \
            + b.reshape(1, 1, 1, -1)

    def bn(z, g, b):
        m = jnp.mean(z, axis=(0, 1, 2), keepdims=True)
        v = jnp.mean((z - m) ** 2, axis=(0, 1, 2), keepdims=True)
        return (z - m) * jax.lax.rsqrt(v + EPS) * g.reshape(1, 1, 1, -1) \
            + b.reshape(1, 1, 1, -1)

    y = jnp.maximum(bn(conv3x3(x, p["w1"], p["b1"]), p["g1"], p["be1"]), 0.0)
    y2 = bn(conv3x3(y, p["w2"], p["b2"]), p["g2"], p["be2"])
    sc = jnp.einsum("nhwc,cd->nhwd", x, p["w3"]) + p["b3"].reshape(1, 1, 1, -1)
    out = jnp.maximum(y2 + sc, 0.0)
    return jnp.transpose(out, (0, 3, 1, 2))


def make_params(key, cin, cmid):
    ks = jax.random.split(key, 10)
    s = 0.1
    return {
        # conv1: nn.Conv2d(cin, cmid, 3, padding=1) as HWIO
        "w1": s * jax.random.normal(ks[0], (3, 3, cin, cmid), jnp.float32),
        "b1": s * jax.random.normal(ks[1], (cmid,), jnp.float32),
        # conv2: nn.Conv2d(cmid, cmid, 3, padding=1)
        "w2": s * jax.random.normal(ks[2], (3, 3, cmid, cmid), jnp.float32),
        "b2": s * jax.random.normal(ks[3], (cmid,), jnp.float32),
        # conv3: nn.Conv2d(cin, cmid, 1)
        "w3": s * jax.random.normal(ks[4], (cin, cmid), jnp.float32),
        "b3": s * jax.random.normal(ks[5], (cmid,), jnp.float32),
        # bn1 / bn2 affine params (randomized to exercise the full math)
        "g1": 1.0 + s * jax.random.normal(ks[6], (cmid,), jnp.float32),
        "be1": s * jax.random.normal(ks[7], (cmid,), jnp.float32),
        "g2": 1.0 + s * jax.random.normal(ks[8], (cmid,), jnp.float32),
        "be2": s * jax.random.normal(ks[9], (cmid,), jnp.float32),
    }


if __name__ == "__main__":
    key = jax.random.PRNGKey(0)
    kx, kp = jax.random.split(key)

    # Small shapes consistent with WCDMARESCNN's first block, Residual(3, 32):
    # input_height=4, input_channels=3, small width slice of 64.
    N, Cin, H, W = 2, 3, 4, 64
    Cmid = 32

    x = jax.random.normal(kx, (N, Cin, H, W), jnp.float32)
    params = make_params(kp, Cin, Cmid)

    out = jax.block_until_ready(residual_forward(x, params))
    ref = jax.block_until_ready(reference_forward(x, params))

    assert out.shape == (N, Cmid, H, W)
    err = float(jnp.max(jnp.abs(out - ref)))
    assert jnp.allclose(out, ref, rtol=1e-4, atol=1e-4), f"max abs err {err}"

    print("KERNEL_OK")
</pallas_src>

<mosaic_0001>
module attributes {stable_mosaic.version = 11 : i64} {
  func.func @_residual_kernel(%arg0: memref<2x8x256xf32, #tpu.memory_space<vmem>>, %arg1: memref<9x1x512xf32, #tpu.memory_space<vmem>>, %arg2: memref<64x72xf32, #tpu.memory_space<vmem>>, %arg3: memref<32x288xf32, #tpu.memory_space<vmem>>, %arg4: memref<32x1xf32, #tpu.memory_space<vmem>>, %arg5: memref<32x1xf32, #tpu.memory_space<vmem>>, %arg6: memref<32x1xf32, #tpu.memory_space<vmem>>, %arg7: memref<32x1xf32, #tpu.memory_space<vmem>>, %arg8: memref<32x1xf32, #tpu.memory_space<vmem>>, %arg9: memref<2x32x256xf32, #tpu.memory_space<vmem>>) attributes {dimension_semantics = [], scalar_prefetch = 0 : i64, scratch_operands = 0 : i64, tpu.core_type = #tpu.core_type<tc>} {
    %c0 = arith.constant 0 : index
    %c0_0 = arith.constant 0 : index
    %c0_1 = arith.constant 0 : index
    %0 = vector.load %arg0[%c0, %c0_0, %c0_1] : memref<2x8x256xf32, #tpu.memory_space<vmem>>, vector<1x8x256xf32>
    %1 = vector.shape_cast %0 : vector<1x8x256xf32> to vector<8x256xf32>
    %c1 = arith.constant 1 : index
    %c0_2 = arith.constant 0 : index
    %c0_3 = arith.constant 0 : index
    %2 = vector.load %arg0[%c1, %c0_2, %c0_3] : memref<2x8x256xf32, #tpu.memory_space<vmem>>, vector<1x8x256xf32>
    %3 = vector.shape_cast %2 : vector<1x8x256xf32> to vector<8x256xf32>
    %4 = tpu.concatenate %1, %3 in 1 : vector<8x256xf32>, vector<8x256xf32> -> vector<8x512xf32>
    %c0_4 = arith.constant 0 : index
    %c0_5 = arith.constant 0 : index
    %5 = vector.load %arg2[%c0_4, %c0_5] : memref<64x72xf32, #tpu.memory_space<vmem>>, vector<64x72xf32>
    %c65_i32 = arith.constant 65 : i32
    %6 = tpu.dynamic_rotate %4 by %c65_i32 dim 1 : vector<8x512xf32>, i32 -> vector<8x512xf32>
    %c0_6 = arith.constant 0 : index
    %c0_7 = arith.constant 0 : index
    %c0_8 = arith.constant 0 : index
    %7 = vector.load %arg1[%c0_6, %c0_7, %c0_8] : memref<9x1x512xf32, #tpu.memory_space<vmem>>, vector<1x1x512xf32>
    %8 = vector.shape_cast %7 : vector<1x1x512xf32> to vector<1x512xf32>
    %9 = vector.broadcast %8 : vector<1x512xf32> to vector<8x512xf32>
    %10 = arith.mulf %6, %9 : vector<8x512xf32>
    %c64_i32 = arith.constant 64 : i32
    %11 = tpu.dynamic_rotate %4 by %c64_i32 dim 1 : vector<8x512xf32>, i32 -> vector<8x512xf32>
    %c1_9 = arith.constant 1 : index
    %c0_10 = arith.constant 0 : index
    %c0_11 = arith.constant 0 : index
    %12 = vector.load %arg1[%c1_9, %c0_10, %c0_11] : memref<9x1x512xf32, #tpu.memory_space<vmem>>, vector<1x1x512xf32>
    %13 = vector.shape_cast %12 : vector<1x1x512xf32> to vector<1x512xf32>
    %14 = vector.broadcast %13 : vector<1x512xf32> to vector<8x512xf32>
    %15 = arith.mulf %11, %14 : vector<8x512xf32>
    %c63_i32 = arith.constant 63 : i32
    %16 = tpu.dynamic_rotate %4 by %c63_i32 dim 1 : vector<8x512xf32>, i32 -> vector<8x512xf32>
    %c2 = arith.constant 2 : index
    %c0_12 = arith.constant 0 : index
    %c0_13 = arith.constant 0 : index
    %17 = vector.load %arg1[%c2, %c0_12, %c0_13] : memref<9x1x512xf32, #tpu.memory_space<vmem>>, vector<1x1x512xf32>
    %18 = vector.shape_cast %17 : vector<1x1x512xf32> to vector<1x512xf32>
    %19 = vector.broadcast %18 : vector<1x512xf32> to vector<8x512xf32>
    %20 = arith.mulf %16, %19 : vector<8x512xf32>
    %c1_i32 = arith.constant 1 : i32
    %21 = tpu.dynamic_rotate %4 by %c1_i32 dim 1 : vector<8x512xf32>, i32 -> vector<8x512xf32>
    %c3 = arith.constant 3 : index
    %c0_14 = arith.constant 0 : index
    %c0_15 = arith.constant 0 : index
    %22 = vector.load %arg1[%c3, %c0_14, %c0_15] : memref<9x1x512xf32, #tpu.memory_space<vmem>>, vector<1x1x512xf32>
    %23 = vector.shape_cast %22 : vector<1x1x512xf32> to vector<1x512xf32>
    %24 = vector.broadcast %23 : vector<1x512xf32> to vector<8x512xf32>
    %25 = arith.mulf %21, %24 : vector<8x512xf32>
    %c511_i32 = arith.constant 511 : i32
    %26 = tpu.dynamic_rotate %4 by %c511_i32 dim 1 : vector<8x512xf32>, i32 -> vector<8x512xf32>
    %c5 = arith.constant 5 : index
    %c0_16 = arith.constant 0 : index
    %c0_17 = arith.constant 0 : index
    %27 = vector.load %arg1[%c5, %c0_16, %c0_17] : memref<9x1x512xf32, #tpu.memory_space<vmem>>, vector<1x1x512xf32>
    %28 = vector.shape_cast %27 : vector<1x1x512xf32> to vector<1x512xf32>
    %29 = vector.broadcast %28 : vector<1x512xf32> to vector<8x512xf32>
    %30 = arith.mulf %26, %29 : vector<8x512xf32>
    %c449_i32 = arith.constant 449 : i32
    %31 = tpu.dynamic_rotate %4 by %c449_i32 dim 1 : vector<8x512xf32>, i32 -> vector<8x512xf32>
    %c6 = arith.constant 6 : index
    %c0_18 = arith.constant 0 : index
    %c0_19 = arith.constant 0 : index
    %32 = vector.load %arg1[%c6, %c0_18, %c0_19] : memref<9x1x512xf32, #tpu.memory_space<vmem>>, vector<1x1x512xf32>
    %33 = vector.shape_cast %32 : vector<1x1x512xf32> to vector<1x512xf32>
    %34 = vector.broadcast %33 : vector<1x512xf32> to vector<8x512xf32>
    %35 = arith.mulf %31, %34 : vector<8x512xf32>
    %c448_i32 = arith.constant 448 : i32
    %36 = tpu.dynamic_rotate %4 by %c448_i32 dim 1 : vector<8x512xf32>, i32 -> vector<8x512xf32>
    %c7 = arith.constant 7 : index
    %c0_20 = arith.constant 0 : index
    %c0_21 = arith.constant 0 : index
    %37 = vector.load %arg1[%c7, %c0_20, %c0_21] : memref<9x1x512xf32, #tpu.memory_space<vmem>>, vector<1x1x512xf32>
    %38 = vector.shape_cast %37 : vector<1x1x512xf32> to vector<1x512xf32>
    %39 = vector.broadcast %38 : vector<1x512xf32> to vector<8x512xf32>
    %40 = arith.mulf %36, %39 : vector<8x512xf32>
    %c447_i32 = arith.constant 447 : i32
    %41 = tpu.dynamic_rotate %4 by %c447_i32 dim 1 : vector<8x512xf32>, i32 -> vector<8x512xf32>
    %c8 = arith.constant 8 : index
    %c0_22 = arith.constant 0 : index
    %c0_23 = arith.constant 0 : index
    %42 = vector.load %arg1[%c8, %c0_22, %c0_23] : memref<9x1x512xf32, #tpu.memory_space<vmem>>, vector<1x1x512xf32>
    %43 = vector.shape_cast %42 : vector<1x1x512xf32> to vector<1x512xf32>
    %44 = vector.broadcast %43 : vector<1x512xf32> to vector<8x512xf32>
    %45 = arith.mulf %41, %44 : vector<8x512xf32>
    %46 = tpu.concatenate %10, %15, %20, %25, %4, %30, %35, %40, %45 in 0 : vector<8x512xf32>, vector<8x512xf32>, vector<8x512xf32>, vector<8x512xf32>, vector<8x512xf32>, vector<8x512xf32>, vector<8x512xf32>, vector<8x512xf32>, vector<8x512xf32> -> vector<72x512xf32>
    %cst = arith.constant dense<0.000000e+00> : vector<64x512xf32>
    %47 = tpu.matmul %5, %46, %cst {dimension_numbers = #tpu.dot_dimension_numbers<[1], [0], [0], [1], [0, 0, 1, 1], [], []>} : vector<64x72xf32>, vector<72x512xf32>, vector<64x512xf32> -> vector<64x512xf32>
    %48 = vector.extract_strided_slice %47 {offsets = [0, 0], sizes = [32, 512], strides = [1, 1]} : vector<64x512xf32> to vector<32x512xf32>
    %49 = vector.extract_strided_slice %47 {offsets = [32, 0], sizes = [32, 512], strides = [1, 1]} : vector<64x512xf32> to vector<32x512xf32>
    %c0_24 = arith.constant 0 : index
    %c0_25 = arith.constant 0 : index
    %50 = vector.load %arg4[%c0_24, %c0_25] : memref<32x1xf32, #tpu.memory_space<vmem>>, vector<32x1xf32>
    %51 = vector.broadcast %50 : vector<32x1xf32> to vector<32x512xf32>
    %52 = arith.addf %49, %51 : vector<32x512xf32>
    %cst_26 = arith.constant dense<0.000000e+00> : vector<32xf32>
    %53 = vector.multi_reduction <add>, %48, %cst_26 [1] : vector<32x512xf32> to vector<32xf32>
    %54 = vector.shape_cast %53 : vector<32xf32> to vector<32x1xf32>
    %55 = arith.mulf %48, %48 : vector<32x512xf32>
    %cst_27 = arith.constant dense<0.000000e+00> : vector<32xf32>
    %56 = vector.multi_reduction <add>, %55, %cst_27 [1] : vector<32x512xf32> to vector<32xf32>
    %57 = vector.shape_cast %56 : vector<32xf32> to vector<32x1xf32>
    %cst_28 = arith.constant 0.001953125 : f32
    %58 = vector.broadcast %cst_28 : f32 to vector<32x1xf32>
    %59 = arith.mulf %54, %58 : vector<32x1xf32>
    %cst_29 = arith.constant 0.001953125 : f32
    %60 = vector.broadcast %cst_29 : f32 to vector<32x1xf32>
    %61 = arith.mulf %57, %60 : vector<32x1xf32>
    %62 = arith.mulf %59, %59 : vector<32x1xf32>
    %63 = arith.subf %61, %62 : vector<32x1xf32>
    %cst_30 = arith.constant 9.99999974E-6 : f32
    %64 = vector.broadcast %cst_30 : f32 to vector<32x1xf32>
    %65 = arith.addf %63, %64 : vector<32x1xf32>
    %66 = math.rsqrt %65 : vector<32x1xf32>
    %c0_31 = arith.constant 0 : index
    %c0_32 = arith.constant 0 : index
    %67 = vector.load %arg5[%c0_31, %c0_32] : memref<32x1xf32, #tpu.memory_space<vmem>>, vector<32x1xf32>
    %68 = arith.mulf %66, %67 : vector<32x1xf32>
    %69 = vector.broadcast %59 : vector<32x1xf32> to vector<32x512xf32>
    %70 = arith.subf %48, %69 : vector<32x512xf32>
    %71 = vector.broadcast %68 : vector<32x1xf32> to vector<32x512xf32>
    %72 = arith.mulf %70, %71 : vector<32x512xf32>
    %c0_33 = arith.constant 0 : index
    %c0_34 = arith.constant 0 : index
    %73 = vector.load %arg6[%c0_33, %c0_34] : memref<32x1xf32, #tpu.memory_space<vmem>>, vector<32x1xf32>
    %74 = vector.broadcast %73 : vector<32x1xf32> to vector<32x512xf32>
    %75 = arith.addf %72, %74 : vector<32x512xf32>
    %cst_35 = arith.constant 0.000000e+00 : f32
    %76 = vector.broadcast %cst_35 : f32 to vector<32x512xf32>
    %77 = arith.maximumf %75, %76 : vector<32x512xf32>
    %c0_36 = arith.constant 0 : index
    %c0_37 = arith.constant 0 : index
    %78 = vector.load %arg3[%c0_36, %c0_37] : memref<32x288xf32, #tpu.memory_space<vmem>>, vector<32x288xf32>
    %c65_i32_38 = arith.constant 65 : i32
    %79 = tpu.dynamic_rotate %77 by %c65_i32_38 dim 1 : vector<32x512xf32>, i32 -> vector<32x512xf32>
    %c0_39 = arith.constant 0 : index
    %c0_40 = arith.constant 0 : index
    %c0_41 = arith.constant 0 : index
    %80 = vector.load %arg1[%c0_39, %c0_40, %c0_41] : memref<9x1x512xf32, #tpu.memory_space<vmem>>, vector<1x1x512xf32>
    %81 = vector.shape_cast %80 : vector<1x1x512xf32> to vector<1x512xf32>
    %82 = vector.broadcast %81 : vector<1x512xf32> to vector<32x512xf32>
    %83 = arith.mulf %79, %82 : vector<32x512xf32>
    %c64_i32_42 = arith.constant 64 : i32
    %84 = tpu.dynamic_rotate %77 by %c64_i32_42 dim 1 : vector<32x512xf32>, i32 -> vector<32x512xf32>
    %c1_43 = arith.constant 1 : index
    %c0_44 = arith.constant 0 : index
    %c0_45 = arith.constant 0 : index
    %85 = vector.load %arg1[%c1_43, %c0_44, %c0_45] : memref<9x1x512xf32, #tpu.memory_space<vmem>>, vector<1x1x512xf32>
    %86 = vector.shape_cast %85 : vector<1x1x512xf32> to vector<1x512xf32>
    %87 = vector.broadcast %86 : vector<1x512xf32> to vector<32x512xf32>
    %88 = arith.mulf %84, %87 : vector<32x512xf32>
    %c63_i32_46 = arith.constant 63 : i32
    %89 = tpu.dynamic_rotate %77 by %c63_i32_46 dim 1 : vector<32x512xf32>, i32 -> vector<32x512xf32>
    %c2_47 = arith.constant 2 : index
    %c0_48 = arith.constant 0 : index
    %c0_49 = arith.constant 0 : index
    %90 = vector.load %arg1[%c2_47, %c0_48, %c0_49] : memref<9x1x512xf32, #tpu.memory_space<vmem>>, vector<1x1x512xf32>
    %91 = vector.shape_cast %90 : vector<1x1x512xf32> to vector<1x512xf32>
    %92 = vector.broadcast %91 : vector<1x512xf32> to vector<32x512xf32>
    %93 = arith.mulf %89, %92 : vector<32x512xf32>
    %c1_i32_50 = arith.constant 1 : i32
    %94 = tpu.dynamic_rotate %77 by %c1_i32_50 dim 1 : vector<32x512xf32>, i32 -> vector<32x512xf32>
    %c3_51 = arith.constant 3 : index
    %c0_52 = arith.constant 0 : index
    %c0_53 = arith.constant 0 : index
    %95 = vector.load %arg1[%c3_51, %c0_52, %c0_53] : memref<9x1x512xf32, #tpu.memory_space<vmem>>, vector<1x1x512xf32>
    %96 = vector.shape_cast %95 : vector<1x1x512xf32> to vector<1x512xf32>
    %97 = vector.broadcast %96 : vector<1x512xf32> to vector<32x512xf32>
    %98 = arith.mulf %94, %97 : vector<32x512xf32>
    %c511_i32_54 = arith.constant 511 : i32
    %99 = tpu.dynamic_rotate %77 by %c511_i32_54 dim 1 : vector<32x512xf32>, i32 -> vector<32x512xf32>
    %c5_55 = arith.constant 5 : index
    %c0_56 = arith.constant 0 : index
    %c0_57 = arith.constant 0 : index
    %100 = vector.load %arg1[%c5_55, %c0_56, %c0_57] : memref<9x1x512xf32, #tpu.memory_space<vmem>>, vector<1x1x512xf32>
    %101 = vector.shape_cast %100 : vector<1x1x512xf32> to vector<1x512xf32>
    %102 = vector.broadcast %101 : vector<1x512xf32> to vector<32x512xf32>
    %103 = arith.mulf %99, %102 : vector<32x512xf32>
    %c449_i32_58 = arith.constant 449 : i32
    %104 = tpu.dynamic_rotate %77 by %c449_i32_58 dim 1 : vector<32x512xf32>, i32 -> vector<32x512xf32>
    %c6_59 = arith.constant 6 : index
    %c0_60 = arith.constant 0 : index
    %c0_61 = arith.constant 0 : index
    %105 = vector.load %arg1[%c6_59, %c0_60, %c0_61] : memref<9x1x512xf32, #tpu.memory_space<vmem>>, vector<1x1x512xf32>
    %106 = vector.shape_cast %105 : vector<1x1x512xf32> to vector<1x512xf32>
    %107 = vector.broadcast %106 : vector<1x512xf32> to vector<32x512xf32>
    %108 = arith.mulf %104, %107 : vector<32x512xf32>
    %c448_i32_62 = arith.constant 448 : i32
    %109 = tpu.dynamic_rotate %77 by %c448_i32_62 dim 1 : vector<32x512xf32>, i32 -> vector<32x512xf32>
    %c7_63 = arith.constant 7 : index
    %c0_64 = arith.constant 0 : index
    %c0_65 = arith.constant 0 : index
    %110 = vector.load %arg1[%c7_63, %c0_64, %c0_65] : memref<9x1x512xf32, #tpu.memory_space<vmem>>, vector<1x1x512xf32>
    %111 = vector.shape_cast %110 : vector<1x1x512xf32> to vector<1x512xf32>
    %112 = vector.broadcast %111 : vector<1x512xf32> to vector<32x512xf32>
    %113 = arith.mulf %109, %112 : vector<32x512xf32>
    %c447_i32_66 = arith.constant 447 : i32
    %114 = tpu.dynamic_rotate %77 by %c447_i32_66 dim 1 : vector<32x512xf32>, i32 -> vector<32x512xf32>
    %c8_67 = arith.constant 8 : index
    %c0_68 = arith.constant 0 : index
    %c0_69 = arith.constant 0 : index
    %115 = vector.load %arg1[%c8_67, %c0_68, %c0_69] : memref<9x1x512xf32, #tpu.memory_space<vmem>>, vector<1x1x512xf32>
    %116 = vector.shape_cast %115 : vector<1x1x512xf32> to vector<1x512xf32>
    %117 = vector.broadcast %116 : vector<1x512xf32> to vector<32x512xf32>
    %118 = arith.mulf %114, %117 : vector<32x512xf32>
    %119 = tpu.concatenate %83, %88, %93, %98, %77, %103, %108, %113, %118 in 0 : vector<32x512xf32>, vector<32x512xf32>, vector<32x512xf32>, vector<32x512xf32>, vector<32x512xf32>, vector<32x512xf32>, vector<32x512xf32>, vector<32x512xf32>, vector<32x512xf32> -> vector<288x512xf32>
    %cst_70 = arith.constant dense<0.000000e+00> : vector<32x512xf32>
    %120 = tpu.matmul %78, %119, %cst_70 {dimension_numbers = #tpu.dot_dimension_numbers<[1], [0], [0], [1], [0, 0, 1, 1], [], []>} : vector<32x288xf32>, vector<288x512xf32>, vector<32x512xf32> -> vector<32x512xf32>
    %cst_71 = arith.constant dense<0.000000e+00> : vector<32xf32>
    %121 = vector.multi_reduction <add>, %120, %cst_71 [1] : vector<32x512xf32> to vector<32xf32>
    %122 = vector.shape_cast %121 : vector<32xf32> to vector<32x1xf32>
    %123 = arith.mulf %120, %120 : vector<32x512xf32>
    %cst_72 = arith.constant dense<0.000000e+00> : vector<32xf32>
    %124 = vector.multi_reduction <add>, %123, %cst_72 [1] : vector<32x512xf32> to vector<32xf32>
    %125 = vector.shape_cast %124 : vector<32xf32> to vector<32x1xf32>
    %cst_73 = arith.constant 0.001953125 : f32
    %126 = vector.broadcast %cst_73 : f32 to vector<32x1xf32>
    %127 = arith.mulf %122, %126 : vector<32x1xf32>
    %cst_74 = arith.constant 0.001953125 : f32
    %128 = vector.broadcast %cst_74 : f32 to vector<32x1xf32>
    %129 = arith.mulf %125, %128 : vector<32x1xf32>
    %130 = arith.mulf %127, %127 : vector<32x1xf32>
    %131 = arith.subf %129, %130 : vector<32x1xf32>
    %cst_75 = arith.constant 9.99999974E-6 : f32
    %132 = vector.broadcast %cst_75 : f32 to vector<32x1xf32>
    %133 = arith.addf %131, %132 : vector<32x1xf32>
    %134 = math.rsqrt %133 : vector<32x1xf32>
    %c0_76 = arith.constant 0 : index
    %c0_77 = arith.constant 0 : index
    %135 = vector.load %arg7[%c0_76, %c0_77] : memref<32x1xf32, #tpu.memory_space<vmem>>, vector<32x1xf32>
    %136 = arith.mulf %134, %135 : vector<32x1xf32>
    %137 = vector.broadcast %127 : vector<32x1xf32> to vector<32x512xf32>
    %138 = arith.subf %120, %137 : vector<32x512xf32>
    %139 = vector.broadcast %136 : vector<32x1xf32> to vector<32x512xf32>
    %140 = arith.mulf %138, %139 : vector<32x512xf32>
    %c0_78 = arith.constant 0 : index
    %c0_79 = arith.constant 0 : index
    %141 = vector.load %arg8[%c0_78, %c0_79] : memref<32x1xf32, #tpu.memory_space<vmem>>, vector<32x1xf32>
    %142 = vector.broadcast %141 : vector<32x1xf32> to vector<32x512xf32>
    %143 = arith.addf %140, %142 : vector<32x512xf32>
    %144 = arith.addf %143, %52 : vector<32x512xf32>
    %cst_80 = arith.constant 0.000000e+00 : f32
    %145 = vector.broadcast %cst_80 : f32 to vector<32x512xf32>
    %146 = arith.maximumf %144, %145 : vector<32x512xf32>
    %147 = vector.extract_strided_slice %146 {offsets = [0, 0], sizes = [32, 256], strides = [1, 1]} : vector<32x512xf32> to vector<32x256xf32>
    %c0_81 = arith.constant 0 : index
    %c0_82 = arith.constant 0 : index
    %c0_83 = arith.constant 0 : index
    %148 = vector.load %arg9[%c0_81, %c0_82, %c0_83] : memref<2x32x256xf32, #tpu.memory_space<vmem>>, vector<1x32x256xf32>
    %149 = vector.shape_cast %148 : vector<1x32x256xf32> to vector<32x256xf32>
    %150 = vector.shape_cast %147 : vector<32x256xf32> to vector<1x32x256xf32>
    tpu.vector_store %arg9[%c0_81, %c0_82, %c0_83], %150 {strides = array<i32>} : memref<2x32x256xf32, #tpu.memory_space<vmem>>, vector<1x32x256xf32>,
    %151 = vector.extract_strided_slice %146 {offsets = [0, 256], sizes = [32, 256], strides = [1, 1]} : vector<32x512xf32> to vector<32x256xf32>
    %c1_84 = arith.constant 1 : index
    %c0_85 = arith.constant 0 : index
    %c0_86 = arith.constant 0 : index
    %152 = vector.load %arg9[%c1_84, %c0_85, %c0_86] : memref<2x32x256xf32, #tpu.memory_space<vmem>>, vector<1x32x256xf32>
    %153 = vector.shape_cast %152 : vector<1x32x256xf32> to vector<32x256xf32>
    %154 = vector.shape_cast %151 : vector<32x256xf32> to vector<1x32x256xf32>
    tpu.vector_store %arg9[%c1_84, %c0_85, %c0_86], %154 {strides = array<i32>} : memref<2x32x256xf32, #tpu.memory_space<vmem>>, vector<1x32x256xf32>,
    return
  }
}

</mosaic_0001>

<bundles_post_ra>
// kernel: tpu_custom_call.1
= control target key start
LH: loop header
LB: loop body
LE: loop exit
PB: predicated region body
PF: predicated region fallthrough
CT: control target
= control target key end

     0   :  { %14 = vsyncpa [#allocation3], 0  ;;  %s3984_s0 = inlined_call_operand.hbm [shape: f32[2,8,256], index: 0, kind: input, shape index: {}]   ;;  %s3985_s1 = inlined_call_operand.hbm [shape: f32[9,1,512], index: 1, kind: input, shape index: {}]   ;;  %s3986_s2 = inlined_call_operand.vmem [shape: f32[64,72], index: 2, kind: input, shape index: {}]   ;;  %s3987_s3 = inlined_call_operand.vmem [shape: f32[32,288], index: 3, kind: input, shape index: {}]   ;;  %s3988_s4 = inlined_call_operand.vmem [shape: f32[32,1], index: 4, kind: input, shape index: {}]   ;;  %s3989_s5 = inlined_call_operand.vmem [shape: f32[32,1], index: 5, kind: input, shape index: {}]   ;;  %s3990_s6 = inlined_call_operand.vmem [shape: f32[32,1], index: 6, kind: input, shape index: {}]   ;;  %s3991_s7 = inlined_call_operand.vmem [shape: f32[32,1], index: 7, kind: input, shape index: {}]   ;;  %s3992_s8 = inlined_call_operand.vmem [shape: f32[32,1], index: 8, kind: input, shape index: {}]   ;;  %s3993_s9 = inlined_call_operand.hbm [shape: f32[2,32,256], index: 9, kind: output, shape index: {}]  }
   0x1   :  { %15 = vsyncpa [#allocation6], 0 }
   0x2   :  { %16 = vsyncpa [#allocation4], 0  ;;  %s2158_s30 = smov [#allocation2]   ;;  %s2086_s13 = scalar_lea.hbm %s3984_s0, 512 }
   0x3   :  { %s22_s10 = sshll.u32 %s2158_s30, 4  ;;  %p2087_p0 = scmp.ne.s32.totalorder %s3984_s0, %s2086_s13  ;;  %s23_s10 = int_to_ptr.vmem [resolvable:$true] %s22_s10 }
   0x4   :  { %p2090_p1 = scmp.lt.u32.totalorder %s2086_s13, %s3984_s0 }
   0x6   :  { %p2092_p2 = pnand %p2090_p1, %p2087_p0 }
   0x8   :  { %2095 = shalt.err (!%p2092_p2)
}
   0x9   :  { %s2096_s18 = scalar_lea.vmem %s23_s10, 512  ;;  %p2101_p4 = scmp.lt.s32.totalorder %s23_s10, %s23_s10 }
   0xa   :  { %p2097_p3 = scmp.ne.s32.totalorder %s23_s10, %s2096_s18  ;;  %p2102_p5 = scmp.lt.s32.totalorder %s2096_s18, %s2096_s18 }
   0xc   :  { %p2103_p6 = por %p2102_p5, %p2101_p4 }
   0xe   :  { %p2104_p7 = pnand %p2103_p6, %p2097_p3 }
  0x10   :  { %2107 = shalt.err (!%p2104_p7)
}
  0x11   :  { %s2159_s19 = smov 256   ;;  %s2160_s20 = smov 16  }
  0x12   :  { %28 = dma.hbm_to_vmem [thread:$0]  %s3984_s0, 512, %s23_s10, [#allocation3], %s2159_s19, %s2159_s19, %s2160_s20  }
  0x13   :  { %s2161_s23 = smov [#allocation5]   ;;  %s2108_s27 = scalar_lea.hbm %s3985_s1, 576 }
  0x14   :  { %s34_s24 = sshll.u32 %s2161_s23, 4  ;;  %p2109_p8 = scmp.ne.s32.totalorder %s3985_s1, %s2108_s27  ;;  %s35_s24 = int_to_ptr.vmem [resolvable:$true] %s34_s24 }
  0x15   :  { %p2112_p9 = scmp.lt.u32.totalorder %s2108_s27, %s3985_s1 }
  0x17   :  { %p2114_p10 = pnand %p2112_p9, %p2109_p8 }
  0x19   :  { %2117 = shalt.err (!%p2114_p10)
}
  0x1a   :  { %s2118_s12 = scalar_lea.vmem %s35_s24, 576  ;;  %p2123_p12 = scmp.lt.s32.totalorder %s35_s24, %s35_s24 }
  0x1b   :  { %p2119_p11 = scmp.ne.s32.totalorder %s35_s24, %s2118_s12  ;;  %p2124_p13 = scmp.lt.s32.totalorder %s2118_s12, %s2118_s12 }
  0x1d   :  { %p2125_p0 = por %p2124_p13, %p2123_p12 }
  0x1f   :  { %p2126_p1 = pnand %p2125_p0, %p2119_p11 }
  0x21   :  { %2129 = shalt.err (!%p2126_p1)
}
  0x22   :  { %s2162_s0 = smov 64   ;;  %s2163_s10 = smov 4  }
  0x23   :  { %40 = dma.hbm_to_vmem [thread:$0]  %s3985_s1, 576, %s35_s24, [#allocation6], %s2162_s0, %s2162_s0, %s2163_s10  }
  0x24   :  { %2152 = dma.done.wait [#allocation3], 512  }
  0x25   :  { %2153 = vsyncadd [#allocation3], 4294966784 }
  0x26   :  { %2154 = dma.done.wait [#allocation6], 576  }
  0x27   :  { %2155 = vsyncadd [#allocation6], 4294966720  ;;  %v2250_v0 = vld [vmem:[#allocation2] sm:$0xff]  ;;  %s2164_s15 = smov 65   ;;  %v2256_v1 = vld [vmem:[#allocation2 + $0x8] sm:$0xff]  ;;  %s2165_s1 = smov 63   ;;  %v82_v5 = vlaneseq }
  0x28   :  { %115 = vrot.lane.b32.xlu1 %v2250_v0, %s2162_s0  ;;  %74 = vrot.lane.b32.xlu0 %v2250_v0, %s2164_s15  ;;  %v2262_v2 = vld [vmem:[#allocation2 + $0x18] sm:$0xff]  ;;  %v2268_v3 = vld [vmem:[#allocation2 + $0x10] sm:$0xff]  ;;  %s2166_s16 = smov 1   ;;  %s2167_s17 = smov 127   ;;  %v3994_v4 = vmov 0.0   ;;  %vm356_vm5 = vcmask 588800  }
  0x29   :  { %445 = vmatprep.mubr.f32.mxu0 %v3994_v4  ;;  %558 = vmatprep.mubr.f32.mxu1 %v3994_v4  ;;  %v92_v6 = vshrl.u32 %v82_v5, 7  ;;  %v2300_v7 = vand.u32 127, %v82_v5  ;;  %v89_v9 = vld [vmem:[#allocation5] sm:$0xf]  ;;  %v129_v10 = vld [vmem:[#allocation5 + $0x4] sm:$0xf] }
  0x2a   :  { %v169_v46 = vld [vmem:[#allocation5 + $0x8] sm:$0xf]  ;;  %v209_v49 = vld [vmem:[#allocation5 + $0xc] sm:$0xf]  ;;  %vm1223_vm6 = vcmask 261120  }
  0x2b   :  { %v2302_v8 = vsub.s32 1, %v92_v6  ;;  %vm84_vm0 = vcmp.lt.s32.totalorder %v2300_v7, 65  ;;  %vm123_vm1 = vcmp.lt.s32.totalorder %v2300_v7, 64  ;;  %v2312_v17 = vsub.s32 0, %v92_v6 }
  0x2c   :  { %117 = vrot.lane.b32.xlu1 %v2256_v1, %s2162_s0  ;;  %76 = vrot.lane.b32.xlu0 %v2256_v1, %s2164_s15  ;;  %v2332_v24 = vsub.s32 2, %v92_v6  ;;  %v2334_v25 = vsub.s32 3, %v92_v6  ;;  %vm163_vm2 = vcmp.lt.s32.totalorder %v2300_v7, 63  ;;  %vm203_vm3 = vcmp.lt.s32.totalorder %v2300_v7, 1 }
  0x2d   :  { %v2307_v13 = vrot.slane %v89_v9, %v2302_v8  ;;  %v2310_v14 = vrot.slane %v129_v10, %v2302_v8  ;;  %v2327_v22 = vrot.slane %v89_v9, %v2312_v17  ;;  %v2330_v23 = vrot.slane %v129_v10, %v2312_v17 }
  0x2e   :  { %v2349_v33 = vrot.slane %v89_v9, %v2334_v25  ;;  %v2352_v34 = vrot.slane %v129_v10, %v2334_v25  ;;  %v2355_v35 = vrot.slane %v89_v9, %v2332_v24  ;;  %v2358_v36 = vrot.slane %v129_v10, %v2332_v24 }
  0x2f   :  { %v2387_v54 = vrot.slane %v169_v46, %v2302_v8  ;;  %v2390_v55 = vrot.slane %v209_v49, %v2302_v8  ;;  %v2402_v62 = vrot.slane %v209_v49, %v2312_v17  ;;  %v2405_v63 = vrot.slane %v169_v46, %v2312_v17 }
  0x30   :  { %121 = vrot.lane.b32.xlu1 %v2262_v2, %s2162_s0  ;;  %80 = vrot.lane.b32.xlu0 %v2262_v2, %s2164_s15  ;;  %vm243_vm4 = vcmp.lt.s32.totalorder %v2300_v7, 127 }
  0x31   :  { %4077 = vst [vmem:[#allocation11_spill] sm:$0xff] %v2402_v62 }
  0x34   :  { %119 = vrot.lane.b32.xlu1 %v2268_v3, %s2162_s0  ;;  %78 = vrot.lane.b32.xlu0 %v2268_v3, %s2164_s15 }
  0x38   :  { %157 = vrot.lane.b32.xlu1 %v2256_v1, %s2165_s1  ;;  %155 = vrot.lane.b32.xlu0 %v2250_v0, %s2165_s1 }
  0x3c   :  { %197 = vrot.lane.b32.xlu1 %v2256_v1, %s2166_s16  ;;  %195 = vrot.lane.b32.xlu0 %v2250_v0, %s2166_s16 }
  0x40   :  { %201 = vrot.lane.b32.xlu1 %v2262_v2, %s2166_s16  ;;  %161 = vrot.lane.b32.xlu0 %v2262_v2, %s2165_s1 }
  0x44   :  { %199 = vrot.lane.b32.xlu1 %v2268_v3, %s2166_s16  ;;  %159 = vrot.lane.b32.xlu0 %v2268_v3, %s2165_s1 }
  0x48   :  { %239 = vrot.lane.b32.xlu1 %v2268_v3, %s2167_s17  ;;  %237 = vrot.lane.b32.xlu0 %v2256_v1, %s2167_s17 }
  0x4c   :  { %241 = vrot.lane.b32.xlu1 %v2262_v2, %s2167_s17  ;;  %235 = vrot.lane.b32.xlu0 %v2250_v0, %s2167_s17 }
  0x9a   :  { %v116_v11 = vpop.permute.xlu1 %115  ;;  %v75_v12 = vpop.permute.xlu0 %74 }
  0x9e   :  { %v118_v15 = vpop.permute.xlu1 %117  ;;  %v77_v16 = vpop.permute.xlu0 %76 }
  0x9f   :  { %v2316_v18 = vsel %vm84_vm0, %v75_v12, %v77_v16  ;;  %v2320_v19 = vsel %vm123_vm1, %v116_v11, %v118_v15 }
  0xa0   :  { %v112_v20 = vmul.f32 %v2307_v13, %v2316_v18  ;;  %v152_v21 = vmul.f32 %v2310_v14, %v2320_v19 }
  0xa2   :  { %v122_v26 = vpop.permute.xlu1 %121  ;;  %v81_v27 = vpop.permute.xlu0 %80  ;;  %v1863_v28 = vpack.c.bf16 %v152_v21, %v112_v20 }
  0xa3   :  { %v2338_v29 = vsel %vm123_vm1, %v122_v26, %v116_v11  ;;  %v2342_v30 = vsel %vm84_vm0, %v81_v27, %v75_v12  ;;  %v2414_v12 = vrot.slane %v209_v49, %v2332_v24 }
  0xa4   :  { %1864 = vmatprep.subr.bf16.mxu0 %v1863_v28  ;;  %v111_v31 = vmul.f32 %v2327_v22, %v2342_v30  ;;  %v151_v32 = vmul.f32 %v2330_v23, %v2338_v29 }
  0xa5   :  { %4078 = vst [vmem:[#allocation12_spill] sm:$0xff] %v2414_v12 }
  0xa6   :  { %v120_v37 = vpop.permute.xlu1 %119  ;;  %v79_v38 = vpop.permute.xlu0 %78  ;;  %v1865_v39 = vpack.c.bf16 %v151_v32, %v111_v31 }
  0xa7   :  { %v2362_v40 = vsel %vm123_vm1, %v118_v15, %v120_v37  ;;  %v2366_v41 = vsel %vm84_vm0, %v77_v16, %v79_v38  ;;  %v2370_v42 = vsel %vm84_vm0, %v79_v38, %v81_v27  ;;  %v2374_v43 = vsel %vm123_vm1, %v120_v37, %v122_v26  ;;  %v249_v16 = vld [vmem:[#allocation5 + $0x14] sm:$0xf] }
  0xa8   :  { %1866 = vmatpush1.bf16.msra.mxu0 %v1865_v39  ;;  %v114_v44 = vmul.f32 %v2349_v33, %v2370_v42  ;;  %v154_v45 = vmul.f32 %v2352_v34, %v2374_v43  ;;  %v113_v47 = vmul.f32 %v2355_v35, %v2366_v41  ;;  %v153_v48 = vmul.f32 %v2358_v36, %v2362_v40 }
  0xa9   :  { %v2417_v15 = vrot.slane %v209_v49, %v2334_v25  ;;  %v2423_v26 = vrot.slane %v169_v46, %v2332_v24  ;;  %v2426_v27 = vrot.slane %v169_v46, %v2334_v25  ;;  %v2430_v37 = vrot.slane %v249_v16, %v2302_v8 }
  0xaa   :  { %v158_v50 = vpop.permute.xlu1 %157  ;;  %v156_v51 = vpop.permute.xlu0 %155  ;;  %v1879_v52 = vpack.c.bf16 %v154_v45, %v114_v44  ;;  %v1881_v53 = vpack.c.bf16 %v153_v48, %v113_v47 }
  0xab   :  { %v2394_v56 = vsel %vm163_vm2, %v156_v51, %v158_v50  ;;  %4079 = vst [vmem:[#allocation13_spill] sm:$0xff] %v2417_v15  ;;  %4080 = vst [vmem:[#allocation14_spill] sm:$0xff] %v2430_v37 }
  0xac   :  { %1880 = vmatprep.subr.bf16.mxu1 %v1879_v52  ;;  %v192_v60 = vmul.f32 %v2387_v54, %v2394_v56 }
  0xad   :  { %1882 = vmatpush1.bf16.msra.mxu1 %v1881_v53  ;;  %v276_v53 = vld [vmem:[#allocation5 + $0x18] sm:$0xf] }
  0xae   :  { %v198_v57 = vpop.permute.xlu1 %197  ;;  %v196_v58 = vpop.permute.xlu0 %195 }
  0xaf   :  { %v206_v59 = vsel %vm203_vm3, %v196_v58, %v198_v57 }
  0xb0   :  { %v232_v61 = vmul.f32 %v2390_v55, %v206_v59 }
  0xb2   :  { %v202_v5 = vpop.permute.xlu1 %201  ;;  %v162_v6 = vpop.permute.xlu0 %161  ;;  %v1867_v9 = vpack.c.bf16 %v232_v61, %v192_v60  ;;  %v2454_v61 = vrot.slane %v276_v53, %v2334_v25 }
  0xb3   :  { %v207_v10 = vsel %vm203_vm3, %v202_v5, %v196_v58  ;;  %v2411_v11 = vsel %vm163_vm2, %v162_v6, %v156_v51  ;;  %v303_v51 = vld [vmem:[#allocation5 + $0x1c] sm:$0xf] }
  0xb4   :  { %v231_v20 = vmul.f32 %v2402_v62, %v207_v10  ;;  %v191_v21 = vmul.f32 %v2405_v63, %v2411_v11  ;;  %1868 = vmatprep.subr.bf16.mxu0 %v1867_v9  ;;  %v2448_v52 = vrot.slane %v303_v51, %v2334_v25  ;;  %v2463_v10 = vrot.slane %v249_v16, %v2332_v24 }
  0xb6   :  { %v200_v28 = vpop.permute.xlu1 %199  ;;  %v160_v31 = vpop.permute.xlu0 %159  ;;  %v1869_v32 = vpack.c.bf16 %v231_v20, %v191_v21  ;;  %4082 = vst [vmem:[#allocation16_spill] sm:$0xff] %v2463_v10  ;;  %v2466_v20 = vrot.slane %v249_v16, %v2312_v17  ;;  %v2469_v21 = vrot.slane %v249_v16, %v2334_v25 }
  0xb7   :  { %v204_v38 = vsel %vm203_vm3, %v200_v28, %v202_v5  ;;  %v205_v39 = vsel %vm203_vm3, %v198_v57, %v200_v28  ;;  %v2438_v44 = vsel %vm163_vm2, %v160_v31, %v162_v6  ;;  %v165_v45 = vsel %vm163_vm2, %v158_v50, %v160_v31 }
  0xb8   :  { %v233_v46 = vmul.f32 %v2414_v12, %v205_v39  ;;  %v234_v47 = vmul.f32 %v2417_v15, %v204_v38  ;;  %v193_v48 = vmul.f32 %v2423_v26, %v165_v45  ;;  %v194_v49 = vmul.f32 %v2426_v27, %v2438_v44  ;;  %1870 = vmatpush1.bf16.msra.mxu0 %v1869_v32 }
  0xb9   :  { %v2451_v57 = vrot.slane %v303_v51, %v2302_v8  ;;  %v2457_v5 = vrot.slane %v276_v53, %v2302_v8  ;;  %4083 = vst [vmem:[#allocation17_spill] sm:$0xff] %v2466_v20  ;;  %4084 = vst [vmem:[#allocation18_spill] sm:$0xff] %v2469_v21  ;;  %v2472_v28 = vrot.slane %v276_v53, %v2312_v17 }
  0xba   :  { %v240_v58 = vpop.permute.xlu1 %239  ;;  %v238_v50 = vpop.permute.xlu0 %237  ;;  %v1883_v59 = vpack.c.bf16 %v234_v47, %v194_v49  ;;  %v1885_v60 = vpack.c.bf16 %v233_v46, %v193_v48  ;;  %v2475_v31 = vrot.slane %v303_v51, %v2312_v17  ;;  %v2478_v32 = vrot.slane %v276_v53, %v2332_v24 }
  0xbb   :  { %4081 = vst [vmem:[#allocation15_spill] sm:$0xff] %v2451_v57  ;;  %v245_v6 = vsel %vm243_vm4, %v238_v50, %v240_v58  ;;  %v328_v38 = vmul.f32 %v2448_v52, %v2338_v29  ;;  %v326_v39 = vmul.f32 %v2451_v57, %v2362_v40  ;;  %v2485_v46 = vrot.slane %v303_v51, %v2332_v24 }
  0xbc   :  { %v272_v9 = vmul.f32 %v2430_v37, %v245_v6  ;;  %1884 = vmatprep.subr.bf16.mxu1 %v1883_v59  ;;  %v299_v49 = vmul.f32 %v2457_v5, %v2366_v41  ;;  %v301_v40 = vmul.f32 %v2454_v61, %v2342_v30  ;;  %v298_v41 = vmul.f32 %v2472_v28, %v2316_v18  ;;  %v330_v30 = vld [vmem:[#allocation5 + $0x20] sm:$0xf] }
  0xbd   :  { %1886 = vmatpush1.bf16.msra.mxu1 %v1885_v60 }
  0xbe   :  { %v242_v16 = vpop.permute.xlu1 %241  ;;  %v236_v47 = vpop.permute.xlu0 %235  ;;  %v1871_v48 = vpack.c.bf16 %v272_v9, %v2256_v1  ;;  %v1891_v18 = vpack.c.bf16 %v328_v38, %v301_v40 }
  0xbf   :  { %v244_v53 = vsel %vm243_vm4, %v240_v58, %v242_v16  ;;  %v246_v59 = vsel %vm243_vm4, %v236_v47, %v238_v50  ;;  %v247_v29 = vsel %vm243_vm4, %v242_v16, %v236_v47  ;;  %v325_v58 = vmul.f32 %v2475_v31, %v2320_v19 }
  0xc0   :  { %v273_v51 = vmul.f32 %v2463_v10, %v244_v53  ;;  %v271_v60 = vmul.f32 %v2466_v20, %v246_v59  ;;  %v274_v1 = vmul.f32 %v2469_v21, %v247_v29  ;;  %1872 = vmatprep.subr.bf16.mxu0 %v1871_v48  ;;  %v300_v16 = vmul.f32 %v2478_v32, %v2370_v42 }
  0xc1   :  { %v327_v47 = vmul.f32 %v2485_v46, %v2374_v43  ;;  %v1875_v48 = vpack.c.bf16 %v326_v39, %v299_v49  ;;  %v2513_v53 = vrot.slane %v330_v30, %v2302_v8  ;;  %v2523_v43 = vrot.slane %v330_v30, %v2332_v24  ;;  %v67_v24 = vld [vmem:[%s3986_s2 + $0x8] sm:$0xff] }
  0xc2   :  { %v1873_v50 = vpack.c.bf16 %v271_v60, %v2250_v0  ;;  %v1887_v6 = vpack.c.bf16 %v274_v1, %v2262_v2  ;;  %v1889_v9 = vpack.c.bf16 %v273_v51, %v2268_v3  ;;  %v2516_v0 = vrot.slane %v330_v30, %v2334_v25 }
  0xc3   :  { %4085 = vst [vmem:[#allocation19_spill] sm:$0xff] %v2513_v53  ;;  %v1877_v2 = vpack.c.bf16 %v325_v58, %v298_v41  ;;  %v2519_v3 = vrot.slane %v330_v30, %v2312_v17  ;;  %v353_v19 = vmul.f32 %v2513_v53, %v165_v45  ;;  %v1893_v42 = vpack.c.bf16 %v327_v47, %v300_v16  ;;  %v66_v17 = vld [vmem:[%s3986_s2] sm:$0xff] }
  0xc4   :  { %1874 = vmatpush1.bf16.msra.mxu0 %v1873_v50  ;;  %1888 = vmatprep.subr.bf16.mxu1 %v1887_v6  ;;  %4086 = vst [vmem:[#allocation20_spill] sm:$0xff] %v2516_v0  ;;  %4088 = vst [vmem:[#allocation22_spill] sm:$0xff] %v2523_v43  ;;  %v355_v8 = vmul.f32 %v2516_v0, %v2411_v11  ;;  %v354_v45 = vmul.f32 %v2523_v43, %v2438_v44  ;;  %v69_v11 = vld [vmem:[%s3986_s2 + $0x18] sm:$0xff]  ;;  %v2169_v44 = vmov 0  }
  0xc5   :  { %1876 = vmatprep.subr.bf16.mxu0 %v1875_v48  ;;  %1890 = vmatpush1.bf16.msra.mxu1 %v1889_v9  ;;  %4087 = vst [vmem:[#allocation21_spill] sm:$0xff] %v2519_v3  ;;  %v352_v25 = vmul.f32 %v2519_v3, %v2394_v56  ;;  %v68_v56 = vld [vmem:[%s3986_s2 + $0x10] sm:$0xff] }
  0xc6   :  { %1892 = vmatprep.subr.bf16.mxu1 %v1891_v18  ;;  %2068 = vset.pattern.permute.xlu1 %v2169_v44 }
  0xc7   :  { %2069 = vset.pattern.permute.xlu0 %v2169_v44 }
  0xc8   :  { %1878 = vmatpush1.bf16.msra.mxu0 %v1877_v2 }
  0xc9   :  { %397 = vmatprep.subr.mxu0 %v353_v19  ;;  %1894 = vmatpush1.bf16.msra.mxu1 %v1893_v42 }
  0xca   :  { %510 = vmatprep.subr.mxu1 %v355_v8 }
  0xcc   :  { %398 = vmatpush1.msra.mxu0 %v352_v25 }
  0xcd   :  { %1839 = vmatmul.mubr.msk.f32.vlgmr.msra.gmra.mrb[0].mxu0 %vm356_vm5, %v66_v17  ;;  %511 = vmatpush1.msra.mxu1 %v354_v45 }
  0xce   :  { %1847 = vmatmul.mubr.msk.f32.vlgmr.msra.gmra.mrb[0].mxu1 %vm356_vm5, %v66_v17  ;;  %451 = vmatprep.mubr.f32.mxu0 %v3994_v4 }
  0xcf   :  { %564 = vmatprep.mubr.f32.mxu1 %v3994_v4 }
  0xd1   :  { %1840 = vmatmul.mubr.msk.f32.gmra.mrb[2].mxu0 %vm356_vm5, %v67_v24 }
  0xd2   :  { %457 = vmatprep.mubr.f32.mxu0 %v3994_v4  ;;  %1848 = vmatmul.mubr.msk.f32.gmra.mrb[2].mxu1 %vm356_vm5, %v67_v24 }
  0xd3   :  { %570 = vmatprep.mubr.f32.mxu1 %v3994_v4 }
  0xd5   :  { %1841 = vmatmul.mubr.msk.f32.gmra.mrb[4].mxu0 %vm356_vm5, %v68_v56 }
  0xd6   :  { %463 = vmatprep.mubr.f32.mxu0 %v3994_v4  ;;  %1849 = vmatmul.mubr.msk.f32.gmra.mrb[4].mxu1 %vm356_vm5, %v68_v56 }
  0xd7   :  { %576 = vmatprep.mubr.f32.mxu1 %v3994_v4 }
  0xd9   :  { %1842 = vmatmul.mubr.msk.f32.gmra.mrb[6].mxu0 %vm356_vm5, %v69_v11 }
  0xda   :  { %1850 = vmatmul.mubr.msk.f32.gmra.mrb[6].mxu1 %vm356_vm5, %v69_v11  ;;  %469 = vmatprep.mubr.f32.mxu0 %v3994_v4 }
  0xdb   :  { %582 = vmatprep.mubr.f32.mxu1 %v3994_v4 }
 0x1a0   :  { %v2559_v38 = vpop.f32.mrb[0].mxu0 }
 0x1a1   :  { %v667_v39 = vmul.f32 %v2559_v38, %v2559_v38  ;;  %v2563_v49 = vpop.f32.mrb[1].mxu0  ;;  %v2565_v59 = vpop.f32.mrb[0].mxu1 }
 0x1a2   :  { %v647_v29 = vadd.f32 %v2563_v49, %v2559_v38  ;;  %v668_v40 = vmul.f32 %v2563_v49, %v2563_v49  ;;  %v2571_v51 = vpop.f32.mrb[1].mxu1  ;;  %v669_v60 = vmul.f32 %v2565_v59, %v2565_v59 }
 0x1a3   :  { %v670_v2 = vmul.f32 %v2571_v51, %v2571_v51 }
 0x1a4   :  { %v2575_v1 = vpop.f32.mrb[2].mxu0  ;;  %v648_v41 = vadd.f32 %v647_v29, %v2565_v59  ;;  %v683_v58 = vadd.f32 %v668_v40, %v667_v39 }
 0x1a5   :  { %v671_v50 = vmul.f32 %v2575_v1, %v2575_v1  ;;  %v2580_v6 = vpop.f32.mrb[3].mxu0  ;;  %v2582_v9 = vpop.f32.mrb[2].mxu1 }
 0x1a6   :  { %v652_v30 = vadd.f32 %v2580_v6, %v2575_v1  ;;  %v672_v16 = vmul.f32 %v2580_v6, %v2580_v6  ;;  %v649_v47 = vadd.f32 %v648_v41, %v2571_v51  ;;  %v2589_v48 = vpop.f32.mrb[3].mxu1  ;;  %v673_v18 = vmul.f32 %v2582_v9, %v2582_v9 }
 0x1a7   :  { %v684_v19 = vadd.f32 %v683_v58, %v669_v60  ;;  %v674_v11 = vmul.f32 %v2589_v48, %v2589_v48 }
 0x1a8   :  { %650 = vadd.xlane.f32.xlu0 %v649_v47  ;;  %v2595_v42 = vpop.f32.mrb[4].mxu0  ;;  %v653_v8 = vadd.f32 %v652_v30, %v2582_v9  ;;  %v688_v25 = vadd.f32 %v672_v16, %v671_v50 }
 0x1a9   :  { %v675_v17 = vmul.f32 %v2595_v42, %v2595_v42  ;;  %v2600_v45 = vpop.f32.mrb[5].mxu0  ;;  %v2602_v24 = vpop.f32.mrb[4].mxu1  ;;  %v685_v56 = vadd.f32 %v684_v19, %v670_v2 }
 0x1aa   :  { %v657_v44 = vadd.f32 %v2600_v45, %v2595_v42  ;;  %v676_v39 = vmul.f32 %v2600_v45, %v2600_v45  ;;  %v654_v29 = vadd.f32 %v653_v8, %v2589_v48  ;;  %v2611_v40 = vpop.f32.mrb[5].mxu1  ;;  %v677_v60 = vmul.f32 %v2602_v24, %v2602_v24 }
 0x1ab   :  { %v689_v41 = vadd.f32 %v688_v25, %v673_v18  ;;  %v678_v8 = vmul.f32 %v2611_v40, %v2611_v40 }
 0x1ac   :  { %686 = vadd.xlane.f32.xlu0 %v685_v56  ;;  %655 = vadd.xlane.f32.xlu1 %v654_v29  ;;  %v2615_v58 = vpop.f32.mrb[6].mxu0  ;;  %v658_v50 = vadd.f32 %v657_v44, %v2602_v24  ;;  %v693_v30 = vadd.f32 %v676_v39, %v675_v17 }
 0x1ad   :  { %v679_v16 = vmul.f32 %v2615_v58, %v2615_v58  ;;  %v2620_v47 = vpop.f32.mrb[7].mxu0  ;;  %v2622_v2 = vpop.f32.mrb[6].mxu1  ;;  %v690_v19 = vadd.f32 %v689_v41, %v674_v11 }
 0x1ae   :  { %v662_v18 = vadd.f32 %v2620_v47, %v2615_v58  ;;  %v680_v25 = vmul.f32 %v2620_v47, %v2620_v47  ;;  %v681_v17 = vmul.f32 %v2622_v2, %v2622_v2  ;;  %v659_v56 = vadd.f32 %v658_v50, %v2611_v40  ;;  %v2633_v44 = vpop.f32.mrb[7].mxu1  ;;  %v788_v50 = vld [vmem:[%s3990_s6 + $0x8] sm:$0xff] }
 0x1af   :  { %v694_v39 = vadd.f32 %v693_v30, %v677_v60  ;;  %v682_v29 = vmul.f32 %v2633_v44, %v2633_v44  ;;  %v787_v60 = vld [vmem:[%s3990_s6] sm:$0xff]  ;;  %v789_v30 = vld [vmem:[%s3990_s6 + $0x10] sm:$0xff] }
 0x1b0   :  { %691 = vadd.xlane.f32.xlu0 %v690_v19  ;;  %660 = vadd.xlane.f32.xlu1 %v659_v56  ;;  %v663_v11 = vadd.f32 %v662_v18, %v2622_v2  ;;  %v698_v41 = vadd.f32 %v680_v25, %v679_v16 }
 0x1b1   :  { %v695_v4 = vadd.f32 %v694_v39, %v678_v8 }
 0x1b2   :  { %v664_v21 = vadd.f32 %v663_v11, %v2633_v44  ;;  %v699_v10 = vadd.f32 %v698_v41, %v681_v17 }
 0x1b4   :  { %696 = vadd.xlane.f32.xlu1 %v695_v4  ;;  %665 = vadd.xlane.f32.xlu0 %v664_v21  ;;  %v700_v20 = vadd.f32 %v699_v10, %v682_v29  ;;  %v790_v4 = vld [vmem:[%s3990_s6 + $0x18] sm:$0xff] }
 0x1b8   :  { %701 = vadd.xlane.f32.xlu0 %v700_v20 }
 0x1c5   :  { %793 = vperm.xlu1 %2068, %v787_v60  }
 0x1c9   :  { %798 = vperm.xlu1 %2068, %v788_v50  }
 0x1cd   :  { %803 = vperm.xlu1 %2068, %v789_v30  }
 0x1d1   :  { %808 = vperm.xlu1 %2068, %v790_v4   ;;  %v728_v4 = vld [vmem:[%s3989_s5 + $0x8] sm:$0xff] }
 0x235   :  { %v651_v10 = vpop.xlane.xlu0 %650 }
 0x236   :  { %v2651_v20 = vmul.f32 0.001953125, %v651_v10 }
 0x238   :  { %v711_v17 = vmul.f32 %v2651_v20, %v2651_v20  ;;  %v4092_v37 = vsub.f32 %v2565_v59, %v2651_v20 }
 0x239   :  { %v687_v8 = vpop.xlane.xlu0 %686  ;;  %v656_v18 = vpop.xlane.xlu1 %655 }
 0x23a   :  { %v707_v56 = vmul.f32 0.001953125, %v687_v8  ;;  %v2663_v39 = vmul.f32 0.001953125, %v656_v18 }
 0x23c   :  { %v715_v11 = vsub.f32 %v707_v56, %v711_v17  ;;  %v712_v8 = vmul.f32 %v2663_v39, %v2663_v39 }
 0x23d   :  { %v692_v60 = vpop.xlane.xlu0 %691  ;;  %v661_v50 = vpop.xlane.xlu1 %660 }
 0x23e   :  { %v719_v10 = vadd.f32 1e-05, %v715_v11  ;;  %v708_v19 = vmul.f32 0.001953125, %v692_v60  ;;  %v2675_v18 = vmul.f32 0.001953125, %v661_v50 }
 0x240   :  { %2070 = vrsqrt.f32 %v719_v10  ;;  %v716_v17 = vsub.f32 %v708_v19, %v712_v8  ;;  %v713_v56 = vmul.f32 %v2675_v18, %v2675_v18 }
 0x241   :  { %v697_v29 = vpop.xlane.xlu1 %696  ;;  %v666_v30 = vpop.xlane.xlu0 %665 }
 0x242   :  { %v720_v50 = vadd.f32 1e-05, %v716_v17  ;;  %v709_v10 = vmul.f32 0.001953125, %v697_v29  ;;  %v2687_v19 = vmul.f32 0.001953125, %v666_v30 }
 0x244   :  { %2072 = vrsqrt.f32 %v720_v50  ;;  %v717_v8 = vsub.f32 %v709_v10, %v713_v56  ;;  %v714_v41 = vmul.f32 %v2687_v19, %v2687_v19  ;;  %v727_v50 = vld [vmem:[%s3989_s5] sm:$0xff] }
 0x245   :  { %v702_v16 = vpop.xlane.xlu0 %701 }
 0x246   :  { %v721_v30 = vadd.f32 1e-05, %v717_v8  ;;  %v710_v17 = vmul.f32 0.001953125, %v702_v16  ;;  %v729_v16 = vld [vmem:[%s3989_s5 + $0x10] sm:$0xff] }
 0x248   :  { %2074 = vrsqrt.f32 %v721_v30  ;;  %v718_v56 = vsub.f32 %v710_v17, %v714_v41  ;;  %v730_v30 = vld [vmem:[%s3989_s5 + $0x18] sm:$0xff] }
 0x24a   :  { %v2071_v10 = vpop.eup %2070  ;;  %v722_v25 = vadd.f32 1e-05, %v718_v56  ;;  %v794_v56 = vpop.permute.xlu1 %793 }
 0x24b   :  { %v731_v60 = vmul.f32 %v2071_v10, %v727_v50 }
 0x24c   :  { %2076 = vrsqrt.f32 %v722_v25 }
 0x24d   :  { %753 = vperm.xlu1 %2068, %v731_v60  }
 0x24e   :  { %v2073_v11 = vpop.eup %2072  ;;  %v799_v50 = vpop.permute.xlu1 %798 }
 0x24f   :  { %v732_v21 = vmul.f32 %v2073_v11, %v728_v4 }
 0x251   :  { %758 = vperm.xlu0 %2069, %v732_v21   ;;  %v4089_v21 = vsub.f32 %v2559_v38, %v2651_v20 }
 0x252   :  { %v2075_v41 = vpop.eup %2074  ;;  %v2711_v60 = vpop.permute.xlu1 %803 }
 0x253   :  { %v733_v8 = vmul.f32 %v2075_v41, %v729_v16  ;;  %v4090_v16 = vsub.f32 %v2563_v49, %v2651_v20  ;;  %v4095_v49 = vsub.f32 %v2575_v1, %v2663_v39 }
 0x255   :  { %763 = vperm.xlu1 %2068, %v733_v8   ;;  %v4091_v8 = vsub.f32 %v2571_v51, %v2651_v20  ;;  %v4096_v51 = vsub.f32 %v2580_v6, %v2663_v39 }
 0x256   :  { %v2077_v25 = vpop.eup %2076  ;;  %v2713_v4 = vpop.permute.xlu1 %808 }
 0x257   :  { %v734_v17 = vmul.f32 %v2077_v25, %v730_v30 }
 0x259   :  { %768 = vperm.xlu1 %2068, %v734_v17  }
 0x2cc   :  { %v754_v11 = vpop.permute.xlu1 %753 }
 0x2cd   :  { %v771_v10 = vmul.f32 %v754_v11, %v4089_v21  ;;  %v772_v41 = vmul.f32 %v754_v11, %v4090_v16  ;;  %v774_v30 = vmul.f32 %v754_v11, %v4091_v8  ;;  %v773_v15 = vmul.f32 %v754_v11, %v4092_v37 }
 0x2cf   :  { %v811_v25 = vadd.f32 %v794_v56, %v771_v10  ;;  %v812_v17 = vadd.f32 %v794_v56, %v772_v41  ;;  %v814_v12 = vadd.f32 %v794_v56, %v774_v30  ;;  %v813_v20 = vadd.f32 %v794_v56, %v773_v15 }
 0x2d0   :  { %v759_v29 = vpop.permute.xlu0 %758  ;;  %v4098_v10 = vsub.f32 %v2589_v48, %v2663_v39 }
 0x2d1   :  { %v2727_v62 = vmax.f32 %v811_v25, 0.0  ;;  %v2729_v38 = vmax.f32 %v812_v17, 0.0  ;;  %v775_v21 = vmul.f32 %v759_v29, %v4095_v49  ;;  %v776_v16 = vmul.f32 %v759_v29, %v4096_v51 }
 0x2d2   :  { %v2741_v11 = vmax.f32 %v814_v12, 0.0  ;;  %v778_v1 = vmul.f32 %v759_v29, %v4098_v10  ;;  %v2756_v15 = vmax.f32 %v813_v20, 0.0  ;;  %v4102_v12 = vsub.f32 %v2582_v9, %v2663_v39 }
 0x2d3   :  { %4093 = vst [vmem:[#allocation23_spill] sm:$0xff] %v2727_v62  ;;  %4094 = vst [vmem:[#allocation24_spill] sm:$0xff] %v2729_v38  ;;  %863 = vrot.lane.b32.xlu0 %v2729_v38, %s2164_s15  ;;  %855 = vrot.lane.b32.xlu1 %v2727_v62, %s2164_s15  ;;  %v815_v37 = vadd.f32 %v799_v50, %v775_v21  ;;  %v816_v59 = vadd.f32 %v799_v50, %v776_v16 }
 0x2d4   :  { %4097 = vst [vmem:[#allocation25_spill] sm:$0xff] %v2741_v11  ;;  %4101 = vst [vmem:[#allocation28_spill] sm:$0xff] %v2756_v15  ;;  %v777_v48 = vmul.f32 %v759_v29, %v4102_v12  ;;  %v818_v56 = vadd.f32 %v799_v50, %v778_v1  ;;  %v764_v9 = vpop.permute.xlu1 %763  ;;  %v4105_v39 = vsub.f32 %v2595_v42, %v2675_v18 }
 0x2d5   :  { %v2746_v41 = vmax.f32 %v815_v37, 0.0  ;;  %v2748_v8 = vmax.f32 %v816_v59, 0.0  ;;  %v4107_v42 = vsub.f32 %v2611_v40, %v2675_v18  ;;  %v4110_v10 = vsub.f32 %v2602_v24, %v2675_v18 }
 0x2d6   :  { %v817_v30 = vadd.f32 %v799_v50, %v777_v48  ;;  %v2765_v25 = vmax.f32 %v818_v56, 0.0  ;;  %v779_v29 = vmul.f32 %v764_v9, %v4105_v39  ;;  %v4106_v50 = vsub.f32 %v2600_v45, %v2675_v18 }
 0x2d7   :  { %4099 = vst [vmem:[#allocation26_spill] sm:$0xff] %v2746_v41  ;;  %4100 = vst [vmem:[#allocation27_spill] sm:$0xff] %v2748_v8  ;;  %879 = vrot.lane.b32.xlu0 %v2741_v11, %s2164_s15  ;;  %857 = vrot.lane.b32.xlu1 %v2746_v41, %s2164_s15  ;;  %v782_v16 = vmul.f32 %v764_v9, %v4107_v42  ;;  %v4109_v45 = vsub.f32 %v2615_v58, %v2687_v19 }
 0x2d8   :  { %4103 = vst [vmem:[#allocation29_spill] sm:$0xff] %v2765_v25  ;;  %v2771_v17 = vmax.f32 %v817_v30, 0.0  ;;  %v780_v49 = vmul.f32 %v764_v9, %v4106_v50  ;;  %v819_v21 = vadd.f32 %v2711_v60, %v779_v29  ;;  %v769_v51 = vpop.permute.xlu1 %768  ;;  %v781_v1 = vmul.f32 %v764_v9, %v4110_v10 }
 0x2d9   :  { %v783_v20 = vmul.f32 %v769_v51, %v4109_v45  ;;  %v822_v40 = vadd.f32 %v2711_v60, %v782_v16  ;;  %v4112_v48 = vsub.f32 %v2620_v47, %v2687_v19  ;;  %v4114_v18 = vsub.f32 %v2633_v44, %v2687_v19 }
 0x2da   :  { %4104 = vst [vmem:[#allocation30_spill] sm:$0xff] %v2771_v17  ;;  %v820_v37 = vadd.f32 %v2711_v60, %v780_v49  ;;  %v2844_v59 = vmax.f32 %v819_v21, 0.0  ;;  %v821_v30 = vadd.f32 %v2711_v60, %v781_v1  ;;  %v4117_v60 = vsub.f32 %v2622_v2, %v2687_v19 }
 0x2db   :  { %871 = vrot.lane.b32.xlu0 %v2756_v15, %s2164_s15  ;;  %865 = vrot.lane.b32.xlu1 %v2748_v8, %s2164_s15  ;;  %v784_v56 = vmul.f32 %v769_v51, %v4112_v48  ;;  %v823_v58 = vadd.f32 %v2713_v4, %v783_v20  ;;  %v2868_v24 = vmax.f32 %v822_v40, 0.0  ;;  %v786_v9 = vmul.f32 %v769_v51, %v4114_v18 }
 0x2dc   :  { %4108 = vst [vmem:[#allocation31_spill] sm:$0xff] %v2844_v59  ;;  %v2857_v12 = vmax.f32 %v820_v37, 0.0  ;;  %v2880_v29 = vmax.f32 %v821_v30, 0.0  ;;  %v785_v50 = vmul.f32 %v769_v51, %v4117_v60 }
 0x2dd   :  { %4113 = vst [vmem:[#allocation33_spill] sm:$0xff] %v2868_v24  ;;  %v824_v39 = vadd.f32 %v2713_v4, %v784_v56  ;;  %v2874_v47 = vmax.f32 %v823_v58, 0.0  ;;  %v826_v49 = vadd.f32 %v2713_v4, %v786_v9 }
 0x2de   :  { %4111 = vst [vmem:[#allocation32_spill] sm:$0xff] %v2857_v12  ;;  %4116 = vst [vmem:[#allocation35_spill] sm:$0xff] %v2880_v29  ;;  %v825_v21 = vadd.f32 %v2713_v4, %v785_v50 }
 0x2df   :  { %919 = vrot.lane.b32.xlu0 %v2727_v62, %s2162_s0  ;;  %881 = vrot.lane.b32.xlu1 %v2765_v25, %s2164_s15  ;;  %4115 = vst [vmem:[#allocation34_spill] sm:$0xff] %v2874_v47  ;;  %v2886_v44 = vmax.f32 %v824_v39, 0.0  ;;  %v2893_v42 = vmax.f32 %v826_v49, 0.0 }
 0x2e0   :  { %v2899_v2 = vmax.f32 %v825_v21, 0.0 }
 0x2e1   :  { %4118 = vst [vmem:[#allocation36_spill] sm:$0xff] %v2886_v44  ;;  %4119 = vst [vmem:[#allocation37_spill] sm:$0xff] %v2893_v42 }
 0x2e2   :  { %4120 = vst [vmem:[#allocation38_spill] sm:$0xff] %v2899_v2 }
 0x2e3   :  { %927 = vrot.lane.b32.xlu0 %v2729_v38, %s2162_s0  ;;  %873 = vrot.lane.b32.xlu1 %v2771_v17, %s2164_s15 }
 0x2e7   :  { %943 = vrot.lane.b32.xlu0 %v2741_v11, %s2162_s0  ;;  %921 = vrot.lane.b32.xlu1 %v2746_v41, %s2162_s0 }
 0x2eb   :  { %935 = vrot.lane.b32.xlu0 %v2756_v15, %s2162_s0  ;;  %929 = vrot.lane.b32.xlu1 %v2748_v8, %s2162_s0 }
 0x2ef   :  { %983 = vrot.lane.b32.xlu0 %v2727_v62, %s2165_s1  ;;  %945 = vrot.lane.b32.xlu1 %v2765_v25, %s2162_s0 }
 0x2f3   :  { %991 = vrot.lane.b32.xlu0 %v2729_v38, %s2165_s1  ;;  %937 = vrot.lane.b32.xlu1 %v2771_v17, %s2162_s0 }
 0x2f7   :  { %1007 = vrot.lane.b32.xlu0 %v2741_v11, %s2165_s1  ;;  %985 = vrot.lane.b32.xlu1 %v2746_v41, %s2165_s1 }
 0x2fb   :  { %999 = vrot.lane.b32.xlu0 %v2756_v15, %s2165_s1  ;;  %993 = vrot.lane.b32.xlu1 %v2748_v8, %s2165_s1 }
 0x2ff   :  { %1047 = vrot.lane.b32.xlu0 %v2727_v62, %s2166_s16  ;;  %1009 = vrot.lane.b32.xlu1 %v2765_v25, %s2165_s1 }
 0x303   :  { %1055 = vrot.lane.b32.xlu0 %v2729_v38, %s2166_s16  ;;  %1001 = vrot.lane.b32.xlu1 %v2771_v17, %s2165_s1 }
 0x307   :  { %1071 = vrot.lane.b32.xlu0 %v2741_v11, %s2166_s16  ;;  %1049 = vrot.lane.b32.xlu1 %v2746_v41, %s2166_s16 }
 0x30b   :  { %1063 = vrot.lane.b32.xlu0 %v2756_v15, %s2166_s16  ;;  %1057 = vrot.lane.b32.xlu1 %v2748_v8, %s2166_s16 }
 0x30f   :  { %1119 = vrot.lane.b32.xlu0 %v2729_v38, %s2167_s17  ;;  %1073 = vrot.lane.b32.xlu1 %v2765_v25, %s2166_s16 }
 0x313   :  { %1127 = vrot.lane.b32.xlu0 %v2756_v15, %s2167_s17  ;;  %1065 = vrot.lane.b32.xlu1 %v2771_v17, %s2166_s16 }
 0x317   :  { %1111 = vrot.lane.b32.xlu0 %v2727_v62, %s2167_s17  ;;  %1121 = vrot.lane.b32.xlu1 %v2748_v8, %s2167_s17  ;;  %v4149_v62 = vld [vmem:[#allocation14_spill] sm:$0xff] }
 0x31b   :  { %1135 = vrot.lane.b32.xlu0 %v2741_v11, %s2167_s17  ;;  %1129 = vrot.lane.b32.xlu1 %v2771_v17, %s2167_s17 }
 0x31f   :  { %859 = vrot.lane.b32.xlu0 %v2844_v59, %s2164_s15  ;;  %1113 = vrot.lane.b32.xlu1 %v2746_v41, %s2167_s17 }
 0x323   :  { %867 = vrot.lane.b32.xlu0 %v2857_v12, %s2164_s15  ;;  %1137 = vrot.lane.b32.xlu1 %v2765_v25, %s2167_s17  ;;  %v4148_v25 = vld [vmem:[#allocation13_spill] sm:$0xff] }
 0x327   :  { %883 = vrot.lane.b32.xlu0 %v2868_v24, %s2164_s15  ;;  %861 = vrot.lane.b32.xlu1 %v2874_v47, %s2164_s15 }
 0x32b   :  { %875 = vrot.lane.b32.xlu0 %v2880_v29, %s2164_s15  ;;  %869 = vrot.lane.b32.xlu1 %v2886_v44, %s2164_s15 }
 0x32f   :  { %923 = vrot.lane.b32.xlu0 %v2844_v59, %s2162_s0  ;;  %885 = vrot.lane.b32.xlu1 %v2893_v42, %s2164_s15 }
 0x333   :  { %931 = vrot.lane.b32.xlu0 %v2857_v12, %s2162_s0  ;;  %877 = vrot.lane.b32.xlu1 %v2899_v2, %s2164_s15 }
 0x337   :  { %947 = vrot.lane.b32.xlu0 %v2868_v24, %s2162_s0  ;;  %925 = vrot.lane.b32.xlu1 %v2874_v47, %s2162_s0 }
 0x33b   :  { %939 = vrot.lane.b32.xlu0 %v2880_v29, %s2162_s0  ;;  %933 = vrot.lane.b32.xlu1 %v2886_v44, %s2162_s0 }
 0x33f   :  { %987 = vrot.lane.b32.xlu0 %v2844_v59, %s2165_s1  ;;  %949 = vrot.lane.b32.xlu1 %v2893_v42, %s2162_s0 }
 0x343   :  { %995 = vrot.lane.b32.xlu0 %v2857_v12, %s2165_s1  ;;  %941 = vrot.lane.b32.xlu1 %v2899_v2, %s2162_s0 }
 0x345   :  { %v856_v19 = vpop.permute.xlu1 %855  ;;  %v864_v4 = vpop.permute.xlu0 %863 }
 0x346   :  { %v895_v37 = vsel %vm84_vm0, %v856_v19, %v864_v4 }
 0x347   :  { %1011 = vrot.lane.b32.xlu0 %v2868_v24, %s2165_s1  ;;  %989 = vrot.lane.b32.xlu1 %v2874_v47, %s2165_s1  ;;  %v904_v10 = vmul.f32 %v895_v37, %v2307_v13  ;;  %v2937_v40 = vmul.f32 %v895_v37, %v2472_v28 }
 0x349   :  { %v880_v51 = vpop.permute.xlu0 %879  ;;  %v858_v16 = vpop.permute.xlu1 %857  ;;  %4121 = vst [vmem:[#allocation39_spill] sm:$0xff] %v2937_v40 }
 0x34a   :  { %v899_v48 = vsel %vm84_vm0, %v880_v51, %v856_v19 }
 0x34b   :  { %1003 = vrot.lane.b32.xlu0 %v2880_v29, %s2165_s1  ;;  %997 = vrot.lane.b32.xlu1 %v2886_v44, %s2165_s1  ;;  %v903_v60 = vmul.f32 %v899_v48, %v2327_v22  ;;  %v2951_v50 = vmul.f32 %v899_v48, %v2454_v61 }
 0x34d   :  { %v872_v45 = vpop.permute.xlu0 %871  ;;  %v866_v20 = vpop.permute.xlu1 %865  ;;  %4123 = vst [vmem:[#allocation41_spill] sm:$0xff] %v2951_v50 }
 0x34e   :  { %v896_v1 = vsel %vm84_vm0, %v858_v16, %v866_v20  ;;  %v891_v49 = vsel %vm84_vm0, %v864_v4, %v872_v45  ;;  %v887_v19 = vsel %vm84_vm0, %v872_v45, %v880_v51 }
 0x34f   :  { %1051 = vrot.lane.b32.xlu0 %v2844_v59, %s2166_s16  ;;  %v908_v56 = vmul.f32 %v896_v1, %v2307_v13  ;;  %v2943_v58 = vmul.f32 %v896_v1, %v2472_v28  ;;  %1013 = vrot.lane.b32.xlu1 %v2893_v42, %s2165_s1  ;;  %v905_v4 = vmul.f32 %v891_v49, %v2355_v35 }
 0x350   :  { %v906_v45 = vmul.f32 %v887_v19, %v2349_v33 }
 0x351   :  { %4122 = vst [vmem:[#allocation40_spill] sm:$0xff] %v2943_v58  ;;  %v920_v30 = vpop.permute.xlu0 %919  ;;  %v882_v9 = vpop.permute.xlu1 %881  ;;  %v1895_v39 = vpack.c.bf16 %v908_v56, %v904_v10 }
 0x352   :  { %v900_v21 = vsel %vm84_vm0, %v882_v9, %v858_v16 }
 0x353   :  { %1059 = vrot.lane.b32.xlu0 %v2857_v12, %s2166_s16  ;;  %v907_v37 = vmul.f32 %v900_v21, %v2327_v22  ;;  %v2963_v10 = vmul.f32 %v900_v21, %v2454_v61  ;;  %1005 = vrot.lane.b32.xlu1 %v2899_v2, %s2165_s1  ;;  %v2974_v21 = vmul.f32 %v887_v19, %v2478_v32 }
 0x354   :  { %1896 = vmatprep.subr.bf16.mxu0 %v1895_v39 }
 0x355   :  { %4124 = vst [vmem:[#allocation42_spill] sm:$0xff] %v2963_v10  ;;  %v928_v1 = vpop.permute.xlu0 %927  ;;  %v1897_v48 = vpack.c.bf16 %v907_v37, %v903_v60  ;;  %v874_v16 = vpop.permute.xlu1 %873  ;;  %4125 = vst [vmem:[#allocation43_spill] sm:$0xff] %v2974_v21 }
 0x356   :  { %v959_v56 = vsel %vm123_vm1, %v920_v30, %v928_v1  ;;  %v888_v18 = vsel %vm84_vm0, %v874_v16, %v882_v9  ;;  %v892_v39 = vsel %vm84_vm0, %v866_v20, %v874_v16  ;;  %v2993_v9 = vmul.f32 %v891_v49, %v2457_v5 }
 0x357   :  { %1075 = vrot.lane.b32.xlu0 %v2868_v24, %s2166_s16  ;;  %v909_v60 = vmul.f32 %v892_v39, %v2355_v35  ;;  %v910_v37 = vmul.f32 %v888_v18, %v2349_v33  ;;  %v2985_v51 = vmul.f32 %v892_v39, %v2457_v5  ;;  %v2988_v6 = vmul.f32 %v888_v18, %v2478_v32 }
 0x358   :  { %1053 = vrot.lane.b32.xlu1 %v2874_v47, %s2166_s16  ;;  %4128 = vst [vmem:[#allocation46_spill] sm:$0xff] %v2993_v9  ;;  %1898 = vmatpush1.bf16.msra.mxu0 %v1897_v48 }
 0x359   :  { %4126 = vst [vmem:[#allocation44_spill] sm:$0xff] %v2985_v51  ;;  %4127 = vst [vmem:[#allocation45_spill] sm:$0xff] %v2988_v6  ;;  %v944_v20 = vpop.permute.xlu0 %943  ;;  %v1969_v19 = vpack.c.bf16 %v909_v60, %v905_v4  ;;  %v922_v50 = vpop.permute.xlu1 %921  ;;  %v1967_v10 = vpack.c.bf16 %v910_v37, %v906_v45  ;;  %v3014_v60 = vmul.f32 %v959_v56, %v2310_v14 }
 0x35a   :  { %v963_v39 = vsel %vm123_vm1, %v944_v20, %v920_v30 }
 0x35b   :  { %1067 = vrot.lane.b32.xlu0 %v2880_v29, %s2166_s16  ;;  %1968 = vmatprep.subr.bf16.mxu1 %v1967_v10  ;;  %v3017_v10 = vmul.f32 %v959_v56, %v2475_v31  ;;  %v3039_v18 = vmul.f32 %v963_v39, %v2448_v52 }
 0x35c   :  { %1061 = vrot.lane.b32.xlu1 %v2886_v44, %s2166_s16  ;;  %1970 = vmatpush1.bf16.msra.mxu1 %v1969_v19 }
 0x35d   :  { %v936_v49 = vpop.permute.xlu0 %935  ;;  %v930_v4 = vpop.permute.xlu1 %929  ;;  %4129 = vst [vmem:[#allocation47_spill] sm:$0xff] %v3017_v10  ;;  %4131 = vst [vmem:[#allocation49_spill] sm:$0xff] %v3039_v18 }
 0x35e   :  { %v951_v48 = vsel %vm123_vm1, %v936_v49, %v944_v20  ;;  %v955_v30 = vsel %vm123_vm1, %v928_v1, %v936_v49  ;;  %v960_v45 = vsel %vm123_vm1, %v922_v50, %v930_v4 }
 0x35f   :  { %1123 = vrot.lane.b32.xlu0 %v2857_v12, %s2167_s17  ;;  %v3020_v37 = vmul.f32 %v960_v45, %v2310_v14  ;;  %v3023_v20 = vmul.f32 %v960_v45, %v2475_v31  ;;  %v3036_v45 = vmul.f32 %v963_v39, %v2330_v23  ;;  %v3062_v40 = vmul.f32 %v951_v48, %v2485_v46 }
 0x360   :  { %1077 = vrot.lane.b32.xlu1 %v2893_v42, %s2166_s16 }
 0x361   :  { %4130 = vst [vmem:[#allocation48_spill] sm:$0xff] %v3023_v20  ;;  %v984_v1 = vpop.permute.xlu0 %983  ;;  %v946_v49 = vpop.permute.xlu1 %945  ;;  %4133 = vst [vmem:[#allocation51_spill] sm:$0xff] %v3062_v40 }
 0x362   :  { %v964_v56 = vsel %vm123_vm1, %v946_v49, %v922_v50  ;;  %v3050_v50 = vmul.f32 %v955_v30, %v2358_v36 }
 0x363   :  { %1131 = vrot.lane.b32.xlu0 %v2880_v29, %s2167_s17  ;;  %v3042_v21 = vmul.f32 %v964_v56, %v2330_v23  ;;  %v3045_v19 = vmul.f32 %v964_v56, %v2448_v52  ;;  %v3059_v56 = vmul.f32 %v951_v48, %v2352_v34  ;;  %v70_v29 = vld [vmem:[%s3986_s2 + $0x20] sm:$0xff] }
 0x364   :  { %1069 = vrot.lane.b32.xlu1 %v2899_v2, %s2166_s16  ;;  %1843 = vmatmul.mubr.msk.f32.gmra.mrb[8].mxu0 %vm356_vm5, %v70_v29 }
 0x365   :  { %4132 = vst [vmem:[#allocation50_spill] sm:$0xff] %v3045_v19  ;;  %v992_v16 = vpop.permute.xlu0 %991  ;;  %v938_v20 = vpop.permute.xlu1 %937  ;;  %v4137_v19 = vmov 0.0   ;;  %1851 = vmatmul.mubr.msk.f32.gmra.mrb[8].mxu1 %vm356_vm5, %v70_v29 }
 0x366   :  { %v1023_v39 = vsel %vm163_vm2, %v984_v1, %v992_v16  ;;  %v952_v58 = vsel %vm123_vm1, %v938_v20, %v946_v49  ;;  %v956_v9 = vsel %vm123_vm1, %v930_v4, %v938_v20  ;;  %v3085_v4 = vmul.f32 %v955_v30, %v2451_v57  ;;  %475 = vmatprep.mubr.f32.mxu0 %v4137_v19 }
 0x367   :  { %1115 = vrot.lane.b32.xlu0 %v2844_v59, %s2167_s17  ;;  %v3071_v10 = vmul.f32 %v956_v9, %v2358_v36  ;;  %v3074_v6 = vmul.f32 %v952_v58, %v2352_v34  ;;  %v3077_v18 = vmul.f32 %v956_v9, %v2451_v57  ;;  %v3080_v48 = vmul.f32 %v952_v58, %v2485_v46  ;;  %v4147_v59 = vld [vmem:[#allocation12_spill] sm:$0xff] }
 0x368   :  { %1125 = vrot.lane.b32.xlu1 %v2886_v44, %s2167_s17  ;;  %4136 = vst [vmem:[#allocation54_spill] sm:$0xff] %v3085_v4  ;;  %588 = vmatprep.mubr.f32.mxu1 %v4137_v19  ;;  %v3116_v30 = vmul.f32 %v1023_v39, %v2387_v54  ;;  %v3122_v29 = vmul.f32 %v1023_v39, %v2519_v3 }
 0x369   :  { %4134 = vst [vmem:[#allocation52_spill] sm:$0xff] %v3077_v18  ;;  %4135 = vst [vmem:[#allocation53_spill] sm:$0xff] %v3080_v48  ;;  %v1008_v20 = vpop.permute.xlu0 %1007  ;;  %v986_v51 = vpop.permute.xlu1 %985  ;;  %v71_v48 = vld [vmem:[%s3986_s2 + $0x28] sm:$0xff] }
 0x36a   :  { %v1027_v9 = vsel %vm163_vm2, %v1008_v20, %v984_v1  ;;  %1844 = vmatmul.mubr.msk.f32.gmra.mrb[10].mxu0 %vm356_vm5, %v71_v48  ;;  %4138 = vst [vmem:[#allocation55_spill] sm:$0xff] %v3122_v29  ;;  %1852 = vmatmul.mubr.msk.f32.gmra.mrb[10].mxu1 %vm356_vm5, %v71_v48 }
 0x36b   :  { %1139 = vrot.lane.b32.xlu0 %v2868_v24, %s2167_s17  ;;  %481 = vmatprep.mubr.f32.mxu0 %v4137_v19  ;;  %v3149_v48 = vmul.f32 %v1027_v9, %v2516_v0 }
 0x36c   :  { %1133 = vrot.lane.b32.xlu1 %v2899_v2, %s2167_s17  ;;  %594 = vmatprep.mubr.f32.mxu1 %v4137_v19 }
 0x36d   :  { %v1000_v1 = vpop.permute.xlu0 %999  ;;  %v994_v49 = vpop.permute.xlu1 %993  ;;  %4140 = vst [vmem:[#allocation57_spill] sm:$0xff] %v3149_v48 }
 0x36e   :  { %v1015_v58 = vsel %vm163_vm2, %v1000_v1, %v1008_v20  ;;  %v1019_v40 = vsel %vm163_vm2, %v992_v16, %v1000_v1  ;;  %v1024_v4 = vsel %vm163_vm2, %v986_v51, %v994_v49 }
 0x36f   :  { %v3125_v20 = vmul.f32 %v1024_v4, %v2387_v54  ;;  %v3128_v16 = vmul.f32 %v1024_v4, %v2519_v3  ;;  %v72_v4 = vld [vmem:[%s3986_s2 + $0x30] sm:$0xff]  ;;  %v3143_v3 = vmul.f32 %v1027_v9, %v2405_v63  ;;  %v3198_v48 = vmul.f32 %v1019_v40, %v2513_v53 }
 0x370   :  { %1117 = vrot.lane.b32.xlu1 %v2874_v47, %s2167_s17  ;;  %1845 = vmatmul.mubr.msk.f32.gmra.mrb[12].mxu0 %vm356_vm5, %v72_v4 }
 0x371   :  { %4139 = vst [vmem:[#allocation56_spill] sm:$0xff] %v3128_v16  ;;  %v1048_v1 = vpop.permute.xlu0 %1047  ;;  %v1010_v57 = vpop.permute.xlu1 %1009  ;;  %487 = vmatprep.mubr.f32.mxu0 %v4137_v19  ;;  %1853 = vmatmul.mubr.msk.f32.gmra.mrb[12].mxu1 %vm356_vm5, %v72_v4  ;;  %v3175_v4 = vmul.f32 %v1015_v58, %v2426_v27  ;;  %4145 = vst [vmem:[#allocation62_spill] sm:$0xff] %v3198_v48  ;;  %v4146_v48 = vld [vmem:[#allocation11_spill] sm:$0xff] }
 0x372   :  { %v1028_v2 = vsel %vm163_vm2, %v1010_v57, %v986_v51  ;;  %v3162_v51 = vmul.f32 %v1019_v40, %v2423_v26  ;;  %600 = vmatprep.mubr.f32.mxu1 %v4137_v19 }
 0x373   :  { %v3152_v18 = vmul.f32 %v1028_v2, %v2405_v63  ;;  %v3155_v39 = vmul.f32 %v1028_v2, %v2516_v0  ;;  %v73_v2 = vld [vmem:[%s3986_s2 + $0x38] sm:$0xff] }
 0x374   :  { %1141 = vrot.lane.b32.xlu1 %v2893_v42, %s2167_s17  ;;  %v3178_v42 = vmul.f32 %v1015_v58, %v2523_v43  ;;  %1846 = vmatmul.mubr.msk.f32.gmra.mrb[14].mxu0 %vm356_vm5, %v73_v2 }
 0x375   :  { %4141 = vst [vmem:[#allocation58_spill] sm:$0xff] %v3155_v39  ;;  %v1056_v29 = vpop.permute.xlu0 %1055  ;;  %v1002_v16 = vpop.permute.xlu1 %1001  ;;  %1854 = vmatmul.mubr.msk.f32.gmra.mrb[14].mxu1 %vm356_vm5, %v73_v2 }
 0x376   :  { %v1087_v24 = vsel %vm203_vm3, %v1048_v1, %v1056_v29  ;;  %4142 = vst [vmem:[#allocation59_spill] sm:$0xff] %v3178_v42  ;;  %v1016_v9 = vsel %vm163_vm2, %v1002_v16, %v1010_v57  ;;  %v1020_v17 = vsel %vm163_vm2, %v994_v49, %v1002_v16  ;;  %v844_v49 = vld [vmem:[%s3987_s3 + $0x8] sm:$0xff] }
 0x377   :  { %v3186_v15 = vmul.f32 %v1020_v17, %v2423_v26  ;;  %v3189_v19 = vmul.f32 %v1016_v9, %v2426_v27  ;;  %v3192_v0 = vmul.f32 %v1020_v17, %v2513_v53  ;;  %v3195_v58 = vmul.f32 %v1016_v9, %v2523_v43  ;;  %1300 = vmatprep.mubr.f32.mxu0 %v844_v49 }
 0x378   :  { %1478 = vmatprep.mubr.f32.mxu1 %v844_v49 }
 0x379   :  { %4143 = vst [vmem:[#allocation60_spill] sm:$0xff] %v3192_v0  ;;  %4144 = vst [vmem:[#allocation61_spill] sm:$0xff] %v3195_v58  ;;  %v1072_v57 = vpop.permute.xlu0 %1071  ;;  %v1050_v39 = vpop.permute.xlu1 %1049 }
 0x37a   :  { %v1091_v9 = vsel %vm203_vm3, %v1072_v57, %v1048_v1  ;;  %v3221_v1 = vmul.f32 %v1087_v24, %v2390_v55 }
 0x37b   :  { %v3231_v0 = vmul.f32 %v1091_v9, %v4146_v48 }
 0x37d   :  { %v1064_v53 = vpop.permute.xlu0 %1063  ;;  %v1058_v2 = vpop.permute.xlu1 %1057 }
 0x37e   :  { %v1079_v16 = vsel %vm203_vm3, %v1064_v53, %v1072_v57  ;;  %v1083_v17 = vsel %vm203_vm3, %v1056_v29, %v1064_v53  ;;  %v1088_v42 = vsel %vm203_vm3, %v1050_v39, %v1058_v2 }
 0x37f   :  { %v3224_v40 = vmul.f32 %v1088_v42, %v2390_v55  ;;  %v3245_v9 = vmul.f32 %v1083_v17, %v4147_v59 }
 0x381   :  { %v1120_v58 = vpop.permute.xlu0 %1119  ;;  %v1074_v43 = vpop.permute.xlu1 %1073 }
 0x382   :  { %v1092_v57 = vsel %vm203_vm3, %v1074_v43, %v1050_v39 }
 0x383   :  { %v3234_v53 = vmul.f32 %v1092_v57, %v4146_v48  ;;  %v3248_v57 = vmul.f32 %v1079_v16, %v4148_v25 }
 0x385   :  { %v1128_v29 = vpop.permute.xlu0 %1127  ;;  %v1066_v42 = vpop.permute.xlu1 %1065 }
 0x386   :  { %v1147_v47 = vsel %vm243_vm4, %v1120_v58, %v1128_v29  ;;  %v1080_v49 = vsel %vm203_vm3, %v1066_v42, %v1074_v43  ;;  %v1084_v39 = vsel %vm203_vm3, %v1058_v2, %v1066_v42 }
 0x387   :  { %v3251_v11 = vmul.f32 %v1084_v39, %v4147_v59  ;;  %v3254_v24 = vmul.f32 %v1080_v49, %v4148_v25  ;;  %v3269_v12 = vmul.f32 %v1147_v47, %v4149_v62  ;;  %v4152_v25 = vld [vmem:[#allocation17_spill] sm:$0xff] }
 0x389   :  { %v1112_v44 = vpop.permute.xlu0 %1111  ;;  %v1122_v43 = vpop.permute.xlu1 %1121  ;;  %4150 = vst [vmem:[#allocation63_spill] sm:$0xff] %v3269_v12  ;;  %v4155_v12 = vld [vmem:[#allocation16_spill] sm:$0xff] }
 0x38a   :  { %v1151_v2 = vsel %vm243_vm4, %v1112_v44, %v1120_v58 }
 0x38b   :  { %v3279_v59 = vmul.f32 %v1151_v2, %v4152_v25 }
 0x38d   :  { %v1136_v42 = vpop.permute.xlu0 %1135  ;;  %v1130_v16 = vpop.permute.xlu1 %1129  ;;  %4153 = vst [vmem:[#allocation65_spill] sm:$0xff] %v3279_v59 }
 0x38e   :  { %v1143_v39 = vsel %vm243_vm4, %v1128_v29, %v1136_v42  ;;  %v1155_v49 = vsel %vm243_vm4, %v1136_v42, %v1112_v44  ;;  %v1148_v41 = vsel %vm243_vm4, %v1122_v43, %v1130_v16 }
 0x38f   :  { %v3272_v38 = vmul.f32 %v1148_v41, %v4149_v62 }
 0x391   :  { %4151 = vst [vmem:[#allocation64_spill] sm:$0xff] %v3272_v38  ;;  %v860_v58 = vpop.permute.xlu0 %859  ;;  %v1114_v8 = vpop.permute.xlu1 %1113  ;;  %v3291_v38 = vmul.f32 %v1143_v39, %v4155_v12 }
 0x392   :  { %v1152_v29 = vsel %vm243_vm4, %v1114_v8, %v1122_v43  ;;  %v4157_v43 = vld [vmem:[#allocation18_spill] sm:$0xff] }
 0x393   :  { %v3282_v44 = vmul.f32 %v1152_v29, %v4152_v25  ;;  %4156 = vst [vmem:[#allocation67_spill] sm:$0xff] %v3291_v38  ;;  %v3294_v2 = vmul.f32 %v1155_v49, %v4157_v43 }
 0x395   :  { %4154 = vst [vmem:[#allocation66_spill] sm:$0xff] %v3282_v44  ;;  %v868_v42 = vpop.permute.xlu0 %867  ;;  %v1138_v41 = vpop.permute.xlu1 %1137  ;;  %4158 = vst [vmem:[#allocation68_spill] sm:$0xff] %v3294_v2 }
 0x396   :  { %v1144_v62 = vsel %vm243_vm4, %v1130_v16, %v1138_v41  ;;  %v1156_v17 = vsel %vm243_vm4, %v1138_v41, %v1114_v8  ;;  %v897_v39 = vsel %vm84_vm0, %v860_v58, %v868_v42 }
 0x397   :  { %v3297_v29 = vmul.f32 %v1144_v62, %v4155_v12  ;;  %v3300_v25 = vmul.f32 %v1156_v17, %v4157_v43  ;;  %v912_v44 = vmul.f32 %v897_v39, %v2307_v13  ;;  %v3312_v17 = vmul.f32 %v897_v39, %v2472_v28 }
 0x399   :  { %4159 = vst [vmem:[#allocation69_spill] sm:$0xff] %v3297_v29  ;;  %4160 = vst [vmem:[#allocation70_spill] sm:$0xff] %v3300_v25  ;;  %v884_v47 = vpop.permute.xlu0 %883  ;;  %v862_v16 = vpop.permute.xlu1 %861 }
 0x39a   :  { %4161 = vst [vmem:[#allocation71_spill] sm:$0xff] %v3312_v17  ;;  %v901_v59 = vsel %vm84_vm0, %v884_v47, %v860_v58 }
 0x39b   :  { %v911_v25 = vmul.f32 %v901_v59, %v2327_v22  ;;  %v3328_v58 = vmul.f32 %v901_v59, %v2454_v61 }
 0x39d   :  { %v876_v41 = vpop.permute.xlu0 %875  ;;  %v870_v49 = vpop.permute.xlu1 %869 }
 0x39e   :  { %v898_v62 = vsel %vm84_vm0, %v862_v16, %v870_v49  ;;  %v893_v39 = vsel %vm84_vm0, %v868_v42, %v876_v41 }
 0x39f   :  { %v916_v38 = vmul.f32 %v898_v62, %v2307_v13  ;;  %v3318_v8 = vmul.f32 %v898_v62, %v2472_v28  ;;  %v889_v13 = vsel %vm84_vm0, %v876_v41, %v884_v47  ;;  %v3356_v41 = vmul.f32 %v893_v39, %v2457_v5 }
 0x3a0   :  { %v914_v59 = vmul.f32 %v889_v13, %v2349_v33  ;;  %v3341_v17 = vmul.f32 %v889_v13, %v2478_v32 }
 0x3a1   :  { %v924_v29 = vpop.permute.xlu0 %923  ;;  %v886_v12 = vpop.permute.xlu1 %885  ;;  %v1899_v2 = vpack.c.bf16 %v916_v38, %v912_v44  ;;  %v913_v44 = vmul.f32 %v893_v39, %v2355_v35 }
 0x3a2   :  { %v902_v48 = vsel %vm84_vm0, %v886_v12, %v862_v16 }
 0x3a3   :  { %v915_v28 = vmul.f32 %v902_v48, %v2327_v22  ;;  %v3334_v62 = vmul.f32 %v902_v48, %v2454_v61  ;;  %1900 = vmatprep.subr.bf16.mxu0 %v1899_v2 }
 0x3a5   :  { %v932_v38 = vpop.permute.xlu0 %931  ;;  %v1901_v43 = vpack.c.bf16 %v915_v28, %v911_v25  ;;  %v878_v42 = vpop.permute.xlu1 %877  ;;  %v2019_v16 = vpack.c.bf16 %v3334_v62, %v3328_v58  ;;  %v843_v58 = vld [vmem:[%s3987_s3] sm:$0xff] }
 0x3a6   :  { %v890_v22 = vsel %vm84_vm0, %v878_v42, %v886_v12  ;;  %v894_v61 = vsel %vm84_vm0, %v870_v49, %v878_v42  ;;  %v4162_v12 = vpack.c.bf16 %v3020_v37, %v3014_v60 }
 0x3a7   :  { %v917_v48 = vmul.f32 %v894_v61, %v2355_v35  ;;  %v918_v47 = vmul.f32 %v890_v22, %v2349_v33  ;;  %v3350_v25 = vmul.f32 %v894_v61, %v2457_v5  ;;  %v3353_v2 = vmul.f32 %v890_v22, %v2478_v32  ;;  %1902 = vmatpush1.bf16.msra.mxu0 %v1901_v43 }
 0x3a8   :  { %1904 = vmatprep.subr.bf16.mxu0 %v4162_v12  ;;  %v961_v32 = vsel %vm123_vm1, %v924_v29, %v932_v38  ;;  %v4163_v5 = vpack.c.bf16 %v3042_v21, %v3036_v45  ;;  %v4164_v43 = vpack.c.bf16 %v3074_v6, %v3059_v56  ;;  %v4165_v6 = vpack.c.bf16 %v3071_v10, %v3050_v50 }
 0x3a9   :  { %v948_v13 = vpop.permute.xlu0 %947  ;;  %v1973_v49 = vpack.c.bf16 %v917_v48, %v913_v44  ;;  %v2021_v35 = vpack.c.bf16 %v3353_v2, %v3341_v17  ;;  %v926_v33 = vpop.permute.xlu1 %925  ;;  %v1971_v28 = vpack.c.bf16 %v918_v47, %v914_v59  ;;  %v1947_v42 = vpack.c.bf16 %v3350_v25, %v3356_v41  ;;  %v4225_v25 = vld [vmem:[#allocation45_spill] sm:$0xff]  ;;  %v4226_v41 = vld [vmem:[#allocation43_spill] sm:$0xff]  ;;  %v4235_v17 = vld [vmem:[#allocation60_spill] sm:$0xff] }
 0x3aa   :  { %v976_v39 = vmul.f32 %v961_v32, %v2310_v14  ;;  %v3377_v59 = vmul.f32 %v961_v32, %v2475_v31  ;;  %v965_v21 = vsel %vm123_vm1, %v948_v13, %v924_v29 }
 0x3ab   :  { %1906 = vmatpush1.bf16.msra.mxu0 %v4163_v5  ;;  %1972 = vmatprep.subr.bf16.mxu1 %v1971_v28  ;;  %v975_v12 = vmul.f32 %v965_v21, %v2330_v23 }
 0x3ac   :  { %1974 = vmatpush1.bf16.msra.mxu1 %v1973_v49  ;;  %v3392_v49 = vmul.f32 %v965_v21, %v2448_v52  ;;  %v4166_v21 = vpack.c.bf16 %v3125_v20, %v3116_v30  ;;  %v4168_v20 = vpack.c.bf16 %v3189_v19, %v3175_v4 }
 0x3ad   :  { %v940_v60 = vpop.permute.xlu0 %939  ;;  %v934_v37 = vpop.permute.xlu1 %933  ;;  %1976 = vmatprep.subr.bf16.mxu1 %v4164_v43 }
 0x3ae   :  { %v962_v44 = vsel %vm123_vm1, %v926_v33, %v934_v37  ;;  %v3400_v10 = vsel %vm123_vm1, %v932_v38, %v940_v60 }
 0x3af   :  { %v980_v45 = vmul.f32 %v962_v44, %v2310_v14  ;;  %v3383_v22 = vmul.f32 %v962_v44, %v2475_v31  ;;  %v953_v31 = vsel %vm123_vm1, %v940_v60, %v948_v13 }
 0x3b0   :  { %1978 = vmatpush1.bf16.msra.mxu1 %v4165_v6  ;;  %v978_v13 = vmul.f32 %v953_v31, %v2352_v34 }
 0x3b1   :  { %v988_v56 = vpop.permute.xlu0 %987  ;;  %v1957_v61 = vpack.c.bf16 %v3383_v22, %v3377_v59  ;;  %v950_v48 = vpop.permute.xlu1 %949  ;;  %v1907_v47 = vpack.c.bf16 %v980_v45, %v976_v39  ;;  %v847_v59 = vld [vmem:[%s3987_s3 + $0x20] sm:$0xff]  ;;  %v4241_v22 = vld [vmem:[#allocation21_spill] sm:$0xff] }
 0x3b2   :  { %v966_v14 = vsel %vm123_vm1, %v950_v48, %v926_v33  ;;  %v977_v33 = vmul.f32 %v3400_v10, %v2358_v36 }
 0x3b3   :  { %v979_v50 = vmul.f32 %v966_v14, %v2330_v23  ;;  %v3404_v29 = vmul.f32 %v966_v14, %v2448_v52  ;;  %1908 = vmatprep.subr.bf16.mxu0 %v1907_v47  ;;  %v3418_v52 = vmul.f32 %v953_v31, %v2485_v46  ;;  %v4169_v31 = vpack.c.bf16 %v3186_v15, %v3162_v51 }
 0x3b5   :  { %v996_v28 = vpop.permute.xlu0 %995  ;;  %v1909_v32 = vpack.c.bf16 %v979_v50, %v975_v12  ;;  %v942_v5 = vpop.permute.xlu1 %941  ;;  %v2027_v43 = vpack.c.bf16 %v3404_v29, %v3392_v49 }
 0x3b6   :  { %v954_v38 = vsel %vm123_vm1, %v942_v5, %v950_v48  ;;  %v3415_v23 = vsel %vm123_vm1, %v934_v37, %v942_v5 }
 0x3b7   :  { %v981_v60 = vmul.f32 %v3415_v23, %v2358_v36  ;;  %v982_v39 = vmul.f32 %v954_v38, %v2352_v34  ;;  %v3424_v44 = vmul.f32 %v954_v38, %v2485_v46  ;;  %1910 = vmatpush1.bf16.msra.mxu0 %v1909_v32  ;;  %v4167_v36 = vpack.c.bf16 %v3152_v18, %v3143_v3 }
 0x3b8   :  { %1912 = vmatprep.subr.bf16.mxu0 %v4166_v21  ;;  %v3436_v34 = vsel %vm163_vm2, %v988_v56, %v996_v28 }
 0x3b9   :  { %v1012_v45 = vpop.permute.xlu0 %1011  ;;  %v1981_v6 = vpack.c.bf16 %v981_v60, %v977_v33  ;;  %v2029_v37 = vpack.c.bf16 %v3424_v44, %v3418_v52  ;;  %v990_v48 = vpop.permute.xlu1 %989  ;;  %v1979_v47 = vpack.c.bf16 %v982_v39, %v978_v13  ;;  %v1040_v3 = vmul.f32 %v3436_v34, %v2387_v54  ;;  %v849_v44 = vld [vmem:[%s3987_s3 + $0x30] sm:$0xff] }
 0x3ba   :  { %v3451_v14 = vsel %vm163_vm2, %v1012_v45, %v988_v56 }
 0x3bb   :  { %1914 = vmatpush1.bf16.msra.mxu0 %v4167_v36  ;;  %1980 = vmatprep.subr.bf16.mxu1 %v1979_v47  ;;  %v1039_v5 = vmul.f32 %v3451_v14, %v2405_v63 }
 0x3bc   :  { %1982 = vmatpush1.bf16.msra.mxu1 %v1981_v6 }
 0x3bd   :  { %v1004_v46 = vpop.permute.xlu0 %1003  ;;  %v998_v30 = vpop.permute.xlu1 %997  ;;  %1984 = vmatprep.subr.bf16.mxu1 %v4168_v20  ;;  %v4172_v20 = vpack.c.bf16 %v3254_v24, %v3248_v57  ;;  %v4174_v57 = vld [vmem:[#allocation11_spill] sm:$0xff] }
 0x3be   :  { %v3443_v12 = vsel %vm163_vm2, %v990_v48, %v998_v30  ;;  %v3466_v56 = vsel %vm163_vm2, %v1004_v46, %v1012_v45  ;;  %v3470_v15 = vsel %vm163_vm2, %v996_v28, %v1004_v46  ;;  %v4170_v45 = vpack.c.bf16 %v3224_v40, %v3221_v1 }
 0x3bf   :  { %v1044_v18 = vmul.f32 %v3443_v12, %v2387_v54  ;;  %v1042_v39 = vmul.f32 %v3466_v56, %v2426_v27  ;;  %v4171_v46 = vpack.c.bf16 %v3234_v53, %v3231_v0  ;;  %v4173_v53 = vpack.c.bf16 %v3251_v11, %v3245_v9 }
 0x3c0   :  { %1986 = vmatpush1.bf16.msra.mxu1 %v4169_v31 }
 0x3c1   :  { %v1052_v19 = vpop.permute.xlu0 %1051  ;;  %v1014_v4 = vpop.permute.xlu1 %1013  ;;  %v1915_v50 = vpack.c.bf16 %v1044_v18, %v1040_v3 }
 0x3c2   :  { %v3458_v32 = vsel %vm163_vm2, %v1014_v4, %v990_v48 }
 0x3c3   :  { %v1043_v54 = vmul.f32 %v3458_v32, %v2405_v63  ;;  %1916 = vmatprep.subr.bf16.mxu0 %v1915_v50  ;;  %v1041_v63 = vmul.f32 %v3470_v15, %v2423_v26 }
 0x3c5   :  { %v1060_v51 = vpop.permute.xlu0 %1059  ;;  %v1917_v33 = vpack.c.bf16 %v1043_v54, %v1039_v5  ;;  %v1006_v13 = vpop.permute.xlu1 %1005 }
 0x3c6   :  { %v3474_v38 = vsel %vm163_vm2, %v1006_v13, %v1014_v4  ;;  %v3478_v60 = vsel %vm163_vm2, %v998_v30, %v1006_v13 }
 0x3c7   :  { %v1045_v28 = vmul.f32 %v3478_v60, %v2423_v26  ;;  %v1046_v21 = vmul.f32 %v3474_v38, %v2426_v27  ;;  %1918 = vmatpush1.bf16.msra.mxu0 %v1917_v33  ;;  %v1089_v26 = vsel %vm203_vm3, %v1052_v19, %v1060_v51 }
 0x3c8   :  { %1920 = vmatprep.subr.bf16.mxu0 %v4170_v45  ;;  %v1104_v1 = vmul.f32 %v1089_v26, %v2390_v55  ;;  %v4180_v26 = vld [vmem:[#allocation23_spill] sm:$0xff] }
 0x3c9   :  { %v1076_v6 = vpop.permute.xlu0 %1075  ;;  %v1989_v48 = vpack.c.bf16 %v1045_v28, %v1041_v63  ;;  %v1987_v36 = vpack.c.bf16 %v1046_v21, %v1042_v39  ;;  %v4175_v63 = vld [vmem:[#allocation12_spill] sm:$0xff]  ;;  %v4176_v28 = vld [vmem:[#allocation13_spill] sm:$0xff] }
 0x3ca   :  { %v1054_v47 = vpop.permute.xlu1 %1053  ;;  %v1093_v0 = vsel %vm203_vm3, %v1076_v6, %v1052_v19 }
 0x3cb   :  { %1922 = vmatpush1.bf16.msra.mxu0 %v4171_v46  ;;  %1988 = vmatprep.subr.bf16.mxu1 %v1987_v36  ;;  %v1103_v50 = vmul.f32 %v1093_v0, %v4174_v57 }
 0x3cc   :  { %1990 = vmatpush1.bf16.msra.mxu1 %v1989_v48  ;;  %v4177_v48 = vld [vmem:[#allocation27_spill] sm:$0xff] }
 0x3cd   :  { %v1068_v30 = vpop.permute.xlu0 %1067  ;;  %1992 = vmatprep.subr.bf16.mxu1 %v4172_v20 }
 0x3ce   :  { %v1062_v27 = vpop.permute.xlu1 %1061  ;;  %v1085_v19 = vsel %vm203_vm3, %v1060_v51, %v1068_v30  ;;  %v4178_v51 = vld [vmem:[#allocation24_spill] sm:$0xff] }
 0x3cf   :  { %v1090_v40 = vsel %vm203_vm3, %v1054_v47, %v1062_v27  ;;  %v1105_v39 = vmul.f32 %v1085_v19, %v4175_v63 }
 0x3d0   :  { %v1108_v3 = vmul.f32 %v1090_v40, %v2390_v55  ;;  %1994 = vmatpush1.bf16.msra.mxu1 %v4173_v53  ;;  %v1081_v55 = vsel %vm203_vm3, %v1068_v30, %v1076_v6  ;;  %v4181_v30 = vld [vmem:[#allocation26_spill] sm:$0xff]  ;;  %v4184_v53 = vld [vmem:[#allocation25_spill] sm:$0xff] }
 0x3d1   :  { %v1124_v18 = vpop.permute.xlu0 %1123  ;;  %v1106_v21 = vmul.f32 %v1081_v55, %v4176_v28  ;;  %v1929_v20 = vpack.c.bf16 %v4181_v30, %v4180_v26 }
 0x3d2   :  { %v1078_v31 = vpop.permute.xlu1 %1077  ;;  %v1923_v4 = vpack.c.bf16 %v1108_v3, %v1104_v1  ;;  %v4183_v1 = vld [vmem:[#allocation36_spill] sm:$0xff] }
 0x3d3   :  { %v1094_v24 = vsel %vm203_vm3, %v1078_v31, %v1054_v47  ;;  %v4179_v47 = vpack.c.bf16 %v4177_v48, %v4178_v51  ;;  %v4193_v48 = vld [vmem:[#allocation64_spill] sm:$0xff]  ;;  %v4194_v51 = vld [vmem:[#allocation63_spill] sm:$0xff] }
 0x3d4   :  { %v1107_v5 = vmul.f32 %v1094_v24, %v4174_v57  ;;  %1924 = vmatprep.subr.bf16.mxu0 %v1923_v4 }
 0x3d5   :  { %v1132_v9 = vpop.permute.xlu0 %1131 }
 0x3d6   :  { %v1925_v54 = vpack.c.bf16 %v1107_v5, %v1103_v50  ;;  %v1070_v11 = vpop.permute.xlu1 %1069  ;;  %v1149_v24 = vsel %vm243_vm4, %v1124_v18, %v1132_v9  ;;  %v4186_v50 = vld [vmem:[#allocation31_spill] sm:$0xff]  ;;  %v4187_v5 = vld [vmem:[#allocation34_spill] sm:$0xff] }
 0x3d7   :  { %v1082_v33 = vsel %vm203_vm3, %v1070_v11, %v1078_v31  ;;  %v1086_v13 = vsel %vm203_vm3, %v1062_v27, %v1070_v11  ;;  %v4182_v27 = vld [vmem:[#allocation32_spill] sm:$0xff]  ;;  %v4185_v31 = vld [vmem:[#allocation29_spill] sm:$0xff]  ;;  %v1933_v55 = vpack.c.bf16 %v4187_v5, %v4186_v50  ;;  %v4189_v11 = vld [vmem:[#allocation30_spill] sm:$0xff] }
 0x3d8   :  { %v1109_v45 = vmul.f32 %v1086_v13, %v4175_v63  ;;  %v1110_v6 = vmul.f32 %v1082_v33, %v4176_v28  ;;  %1926 = vmatpush1.bf16.msra.mxu0 %v1925_v54  ;;  %v1931_v3 = vpack.c.bf16 %v4183_v1, %v4182_v27  ;;  %v1999_v4 = vpack.c.bf16 %v4185_v31, %v4184_v53  ;;  %v4188_v54 = vld [vmem:[#allocation28_spill] sm:$0xff]  ;;  %v4190_v13 = vld [vmem:[#allocation14_spill] sm:$0xff]  ;;  %v4191_v28 = vld [vmem:[#allocation33_spill] sm:$0xff] }
 0x3d9   :  { %1928 = vmatprep.subr.bf16.mxu0 %v4179_v47  ;;  %v1116_v0 = vpop.permute.xlu0 %1115  ;;  %v2001_v33 = vpack.c.bf16 %v4189_v11, %v4188_v54  ;;  %v1168_v63 = vmul.f32 %v1149_v24, %v4190_v13  ;;  %v4195_v47 = vpack.c.bf16 %v4193_v48, %v4194_v51  ;;  %v4197_v27 = vld [vmem:[#allocation38_spill] sm:$0xff]  ;;  %v4203_v54 = vld [vmem:[#allocation68_spill] sm:$0xff]  ;;  %v4210_v51 = vld [vmem:[#allocation69_spill] sm:$0xff] }
 0x3da   :  { %v1997_v36 = vpack.c.bf16 %v1109_v45, %v1105_v39  ;;  %v1126_v46 = vpop.permute.xlu1 %1125  ;;  %v1995_v40 = vpack.c.bf16 %v1110_v6, %v1106_v21  ;;  %v4192_v21 = vld [vmem:[#allocation37_spill] sm:$0xff]  ;;  %v1153_v6 = vsel %vm243_vm4, %v1116_v0, %v1124_v18  ;;  %v4199_v18 = vld [vmem:[#allocation66_spill] sm:$0xff] }
 0x3db   :  { %v2003_v45 = vpack.c.bf16 %v4192_v21, %v4191_v28 }
 0x3dc   :  { %1930 = vmatpush1.bf16.msra.mxu0 %v1929_v20  ;;  %1996 = vmatprep.subr.bf16.mxu1 %v1995_v40  ;;  %v4196_v40 = vld [vmem:[#allocation35_spill] sm:$0xff] }
 0x3dd   :  { %1932 = vmatprep.subr.bf16.mxu0 %v1931_v3  ;;  %1998 = vmatpush1.bf16.msra.mxu1 %v1997_v36  ;;  %v1140_v36 = vpop.permute.xlu0 %1139  ;;  %v2005_v1 = vpack.c.bf16 %v4197_v27, %v4196_v40  ;;  %v4198_v3 = vld [vmem:[#allocation17_spill] sm:$0xff]  ;;  %v4216_v40 = vld [vmem:[#allocation42_spill] sm:$0xff] }
 0x3de   :  { %v1134_v57 = vpop.permute.xlu1 %1133  ;;  %2000 = vmatprep.subr.bf16.mxu1 %v1999_v4  ;;  %v1167_v53 = vmul.f32 %v1153_v6, %v4198_v3  ;;  %v4200_v4 = vld [vmem:[#allocation65_spill] sm:$0xff]  ;;  %v1145_v50 = vsel %vm243_vm4, %v1132_v9, %v1140_v36  ;;  %v1157_v5 = vsel %vm243_vm4, %v1140_v36, %v1116_v0  ;;  %v4206_v9 = vld [vmem:[#allocation18_spill] sm:$0xff] }
 0x3df   :  { %v1150_v19 = vsel %vm243_vm4, %v1126_v46, %v1134_v57  ;;  %v4201_v24 = vpack.c.bf16 %v4199_v18, %v4200_v4  ;;  %v1170_v28 = vmul.f32 %v1157_v5, %v4206_v9  ;;  %v4208_v6 = vld [vmem:[#allocation46_spill] sm:$0xff]  ;;  %v4217_v27 = vld [vmem:[#allocation41_spill] sm:$0xff] }
 0x3e0   :  { %v1172_v39 = vmul.f32 %v1150_v19, %v4190_v13  ;;  %1934 = vmatpush1.bf16.msra.mxu0 %v1933_v55  ;;  %v4202_v19 = vld [vmem:[#allocation70_spill] sm:$0xff] }
 0x3e1   :  { %1936 = vmatprep.subr.bf16.mxu0 %v4195_v47  ;;  %2002 = vmatpush1.bf16.msra.mxu1 %v2001_v33  ;;  %v4204_v11 = vpack.c.bf16 %v4202_v19, %v4203_v54  ;;  %v4211_v47 = vld [vmem:[#allocation67_spill] sm:$0xff]  ;;  %v4232_v19 = vld [vmem:[#allocation49_spill] sm:$0xff] }
 0x3e2   :  { %v1118_v26 = vpop.permute.xlu1 %1117  ;;  %2004 = vmatprep.subr.bf16.mxu1 %v2003_v45  ;;  %v1939_v30 = vpack.c.bf16 %v1172_v39, %v1168_v63  ;;  %v4205_v63 = vld [vmem:[#allocation16_spill] sm:$0xff]  ;;  %v4212_v36 = vpack.c.bf16 %v4210_v51, %v4211_v47  ;;  %v4251_v51 = vld [vmem:[#allocation59_spill] sm:$0xff] }
 0x3e3   :  { %v1154_v20 = vsel %vm243_vm4, %v1118_v26, %v1126_v46  ;;  %v1169_v39 = vmul.f32 %v1145_v50, %v4205_v63  ;;  %v4207_v45 = vld [vmem:[#allocation44_spill] sm:$0xff]  ;;  %v4223_v50 = vld [vmem:[#allocation54_spill] sm:$0xff] }
 0x3e4   :  { %v1171_v31 = vmul.f32 %v1154_v20, %v4198_v3  ;;  %1938 = vmatpush1.bf16.msra.mxu0 %v4201_v24  ;;  %v4209_v48 = vpack.c.bf16 %v4207_v45, %v4208_v6  ;;  %v4219_v3 = vld [vmem:[#allocation15_spill] sm:$0xff]  ;;  %v4222_v24 = vld [vmem:[#allocation52_spill] sm:$0xff]  ;;  %v850_v45 = vld [vmem:[%s3987_s3 + $0x38] sm:$0xff] }
 0x3e5   :  { %1940 = vmatprep.subr.bf16.mxu0 %v1939_v30  ;;  %2006 = vmatpush1.bf16.msra.mxu1 %v2005_v1  ;;  %v4214_v30 = vld [vmem:[#allocation39_spill] sm:$0xff]  ;;  %v4218_v1 = vpack.c.bf16 %v4216_v40, %v4217_v27  ;;  %v1200_v4 = vmul.f32 %v3400_v10, %v4219_v3  ;;  %v4224_v5 = vpack.c.bf16 %v4222_v24, %v4223_v50  ;;  %v4231_v10 = vld [vmem:[#allocation50_spill] sm:$0xff] }
 0x3e6   :  { %v1941_v46 = vpack.c.bf16 %v1171_v31, %v1167_v53  ;;  %v1142_v55 = vpop.permute.xlu1 %1141  ;;  %2008 = vmatprep.subr.bf16.mxu1 %v4204_v11  ;;  %v1204_v53 = vmul.f32 %v3415_v23, %v4219_v3  ;;  %v4220_v31 = vld [vmem:[#allocation71_spill] sm:$0xff]  ;;  %v4233_v54 = vpack.c.bf16 %v4231_v10, %v4232_v19  ;;  %v4249_v6 = vld [vmem:[#allocation22_spill] sm:$0xff] }
 0x3e7   :  { %v1146_v33 = vsel %vm243_vm4, %v1134_v57, %v1142_v55  ;;  %v1158_v13 = vsel %vm243_vm4, %v1142_v55, %v1118_v26  ;;  %v4213_v26 = vld [vmem:[#allocation40_spill] sm:$0xff]  ;;  %v4221_v18 = vpack.c.bf16 %v3318_v8, %v4220_v31  ;;  %v4229_v55 = vld [vmem:[#allocation47_spill] sm:$0xff] }
 0x3e8   :  { %v1173_v0 = vmul.f32 %v1146_v33, %v4205_v63  ;;  %v1174_v21 = vmul.f32 %v1158_v13, %v4206_v9  ;;  %1942 = vmatpush1.bf16.msra.mxu0 %v1941_v46  ;;  %v4215_v20 = vpack.c.bf16 %v4213_v26, %v4214_v30  ;;  %v1955_v23 = vpack.c.bf16 %v1204_v53, %v1200_v4  ;;  %v4228_v46 = vld [vmem:[#allocation48_spill] sm:$0xff]  ;;  %v4234_v11 = vld [vmem:[#allocation19_spill] sm:$0xff] }
 0x3e9   :  { %1944 = vmatprep.subr.bf16.mxu0 %v4209_v48  ;;  %2010 = vmatpush1.bf16.msra.mxu1 %v4212_v36  ;;  %v4230_v8 = vpack.c.bf16 %v4228_v46, %v4229_v55  ;;  %v1220_v33 = vmul.f32 %v3478_v60, %v4234_v11  ;;  %v1216_v62 = vmul.f32 %v3470_v15, %v4234_v11  ;;  %v4239_v13 = vld [vmem:[#allocation51_spill] sm:$0xff] }
 0x3ea   :  { %v2013_v57 = vpack.c.bf16 %v1173_v0, %v1169_v39  ;;  %v2011_v7 = vpack.c.bf16 %v1174_v21, %v1170_v28  ;;  %v1215_v60 = vmul.f32 %v3436_v34, %v4241_v22  ;;  %v4242_v39 = vld [vmem:[#allocation20_spill] sm:$0xff]  ;;  %v4244_v0 = vld [vmem:[#allocation55_spill] sm:$0xff]  ;;  %v4247_v34 = vld [vmem:[#allocation57_spill] sm:$0xff]  ;;  %v1221_v48 = vmul.f32 %v3474_v38, %v4249_v6 }
 0x3eb   :  { %v1963_v15 = vpack.c.bf16 %v1220_v33, %v1216_v62  ;;  %v1222_v9 = vmul.f32 %v3458_v32, %v4242_v39  ;;  %v4243_v28 = vld [vmem:[#allocation56_spill] sm:$0xff]  ;;  %v1218_v49 = vmul.f32 %v3451_v14, %v4242_v39  ;;  %v4250_v14 = vld [vmem:[#allocation61_spill] sm:$0xff]  ;;  %v851_v30 = vld [vmem:[%s3987_s3 + $0x40] sm:$0xff] }
 0x3ec   :  { %1946 = vmatpush1.bf16.msra.mxu0 %v4215_v20  ;;  %2012 = vmatprep.subr.bf16.mxu1 %v2011_v7  ;;  %v4245_v21 = vpack.c.bf16 %v4243_v28, %v4244_v0  ;;  %v4252_v47 = vpack.c.bf16 %v4250_v14, %v4251_v51  ;;  %v853_v38 = vld [vmem:[%s3987_s3 + $0x50] sm:$0xff]  ;;  %v848_v26 = vld [vmem:[%s3987_s3 + $0x28] sm:$0xff]  ;;  %v854_v20 = vld [vmem:[%s3987_s3 + $0x58] sm:$0xff] }
 0x3ed   :  { %1948 = vmatprep.subr.bf16.mxu0 %v1947_v42  ;;  %2014 = vmatpush1.bf16.msra.mxu1 %v2013_v57  ;;  %v4227_v42 = vpack.c.bf16 %v4225_v25, %v4226_v41  ;;  %v2035_v52 = vpack.c.bf16 %v1222_v9, %v1218_v49  ;;  %v852_v57 = vld [vmem:[%s3987_s3 + $0x48] sm:$0xff]  ;;  %v845_v7 = vld [vmem:[%s3987_s3 + $0x10] sm:$0xff] }
 0x3ee   :  { %2016 = vmatprep.subr.bf16.mxu1 %v4218_v1 }
 0x3f0   :  { %1950 = vmatpush1.bf16.msra.mxu0 %v4221_v18 }
 0x3f1   :  { %1952 = vmatprep.subr.bf16.mxu0 %v4224_v5  ;;  %2018 = vmatpush1.bf16.msra.mxu1 %v4227_v42 }
 0x3f2   :  { %2020 = vmatprep.subr.bf16.mxu1 %v2019_v16  ;;  %v4236_v16 = vld [vmem:[#allocation62_spill] sm:$0xff] }
 0x3f3   :  { %v4237_v2 = vpack.c.bf16 %v4235_v17, %v4236_v16 }
 0x3f4   :  { %1954 = vmatpush1.bf16.msra.mxu0 %v4230_v8 }
 0x3f5   :  { %1956 = vmatprep.subr.bf16.mxu0 %v1955_v23  ;;  %2022 = vmatpush1.bf16.msra.mxu1 %v2021_v35  ;;  %v4238_v35 = vld [vmem:[#allocation53_spill] sm:$0xff] }
 0x3f6   :  { %2024 = vmatprep.subr.bf16.mxu1 %v4233_v54  ;;  %v4240_v63 = vpack.c.bf16 %v4238_v35, %v4239_v13 }
 0x3f8   :  { %1958 = vmatpush1.bf16.msra.mxu0 %v1957_v61  ;;  %v1219_v61 = vmul.f32 %v3443_v12, %v4241_v22  ;;  %v846_v12 = vld [vmem:[%s3987_s3 + $0x18] sm:$0xff] }
 0x3f9   :  { %1960 = vmatprep.subr.bf16.mxu0 %v4237_v2  ;;  %2026 = vmatpush1.bf16.msra.mxu1 %v4240_v63 }
 0x3fa   :  { %2028 = vmatprep.subr.bf16.mxu1 %v2027_v43  ;;  %v1965_v29 = vpack.c.bf16 %v1219_v61, %v1215_v60  ;;  %v4246_v43 = vld [vmem:[#allocation58_spill] sm:$0xff] }
 0x3fb   :  { %1301 = vmatmul.mubr.f32.vlgmr.msra.gmra.mrb[16].mxu0 %v843_v58  ;;  %v4248_v32 = vpack.c.bf16 %v4246_v43, %v4247_v34 }
 0x3fc   :  { %1962 = vmatpush1.bf16.msra.mxu0 %v4245_v21  ;;  %1306 = vmatprep.mubr.f32.mxu0 %v847_v59 }
 0x3fd   :  { %1964 = vmatprep.subr.bf16.mxu0 %v1963_v15  ;;  %2030 = vmatpush1.bf16.msra.mxu1 %v2029_v37  ;;  %v1217_v37 = vmul.f32 %v3466_v56, %v4249_v6  ;;  %v4253_v56 = vmov 0.0  }
 0x3fe   :  { %2032 = vmatprep.subr.bf16.mxu1 %v4248_v32 }
 0x3ff   :  { %1307 = vmatmul.mubr.f32.gmra.mrb[18].mxu0 %v846_v12  ;;  %v2037_v36 = vpack.c.bf16 %v1221_v48, %v1217_v37 }
 0x400   :  { %1966 = vmatpush1.bf16.msra.mxu0 %v1965_v29  ;;  %1479 = vmatmul.mubr.f32.vlgmr.msra.gmra.mrb[16].mxu1 %v843_v58 }
 0x401   :  { %2034 = vmatpush1.bf16.msra.mxu1 %v4252_v47  ;;  %1312 = vmatprep.mubr.f32.mxu0 %v850_v45 }
 0x402   :  { %2036 = vmatprep.subr.bf16.mxu1 %v2035_v52  ;;  %1484 = vmatprep.mubr.f32.mxu1 %v847_v59 }
 0x403   :  { %1313 = vmatmul.mubr.f32.gmra.mrb[20].mxu0 %v849_v44 }
 0x404   :  { %1485 = vmatmul.mubr.f32.gmra.mrb[18].mxu1 %v846_v12  ;;  %1318 = vmatprep.mubr.f32.mxu0 %v853_v38 }
 0x405   :  { %2038 = vmatpush1.bf16.msra.mxu1 %v2037_v36  ;;  %1490 = vmatprep.mubr.f32.mxu1 %v850_v45 }
 0x407   :  { %1319 = vmatmul.mubr.f32.gmra.mrb[22].mxu0 %v852_v57 }
 0x408   :  { %1491 = vmatmul.mubr.f32.gmra.mrb[20].mxu1 %v849_v44  ;;  %1389 = vmatprep.mubr.f32.mxu0 %v4253_v56 }
 0x409   :  { %1496 = vmatprep.mubr.f32.mxu1 %v853_v38 }
 0x40b   :  { %1855 = vmatmul.mubr.msk.f32.vlgmr.msra.gmra.mrb[16].mxu0 %vm1223_vm6, %v845_v7 }
 0x40c   :  { %1497 = vmatmul.mubr.f32.gmra.mrb[22].mxu1 %v852_v57  ;;  %1395 = vmatprep.mubr.f32.mxu0 %v4253_v56 }
 0x40d   :  { %1567 = vmatprep.mubr.f32.mxu1 %v4253_v56 }
 0x40f   :  { %1856 = vmatmul.mubr.msk.f32.gmra.mrb[18].mxu0 %vm1223_vm6, %v848_v26 }
 0x410   :  { %1859 = vmatmul.mubr.msk.f32.vlgmr.msra.gmra.mrb[16].mxu1 %vm1223_vm6, %v845_v7  ;;  %1401 = vmatprep.mubr.f32.mxu0 %v4253_v56 }
 0x411   :  { %1573 = vmatprep.mubr.f32.mxu1 %v4253_v56 }
 0x413   :  { %1857 = vmatmul.mubr.msk.f32.gmra.mrb[20].mxu0 %vm1223_vm6, %v851_v30 }
 0x414   :  { %1860 = vmatmul.mubr.msk.f32.gmra.mrb[18].mxu1 %vm1223_vm6, %v848_v26  ;;  %1407 = vmatprep.mubr.f32.mxu0 %v4253_v56 }
 0x415   :  { %1579 = vmatprep.mubr.f32.mxu1 %v4253_v56 }
 0x417   :  { %1858 = vmatmul.mubr.msk.f32.gmra.mrb[22].mxu0 %vm1223_vm6, %v854_v20 }
 0x418   :  { %1861 = vmatmul.mubr.msk.f32.gmra.mrb[20].mxu1 %vm1223_vm6, %v851_v30 }
 0x419   :  { %1585 = vmatprep.mubr.f32.mxu1 %v4253_v56 }
 0x41c   :  { %1862 = vmatmul.mubr.msk.f32.gmra.mrb[22].mxu1 %vm1223_vm6, %v854_v20 }
 0x437   :  { %v3703_v40 = vpop.f32.mrb[8].mxu0 }
 0x438   :  { %v3705_v27 = vpop.f32.mrb[9].mxu0  ;;  %v3707_v1 = vpop.f32.mrb[8].mxu1 }
 0x439   :  { %v3709_v3 = vpop.f32.mrb[9].mxu1 }
 0x43d   :  { %v3711_v53 = vpop.f32.mrb[10].mxu0  ;;  %v3715_v18 = vpop.f32.mrb[10].mxu1 }
 0x43e   :  { %v3713_v31 = vpop.f32.mrb[11].mxu0  ;;  %v3717_v4 = vpop.f32.mrb[11].mxu1 }
 0x443   :  { %v3719_v24 = vpop.f32.mrb[12].mxu0 }
 0x444   :  { %v3721_v50 = vpop.f32.mrb[13].mxu0  ;;  %v3723_v5 = vpop.f32.mrb[12].mxu1 }
 0x445   :  { %v3725_v25 = vpop.f32.mrb[13].mxu1 }
 0x447   :  { %v3727_v41 = vpop.f32.mrb[14].mxu0 }
 0x448   :  { %v3729_v42 = vpop.f32.mrb[15].mxu0  ;;  %v3731_v23 = vpop.f32.mrb[14].mxu1 }
 0x449   :  { %v3733_v46 = vpop.f32.mrb[15].mxu1 }
 0x4de   :  { %v3735_v55 = vpop.f32.mrb[16].mxu0 }
 0x4df   :  { %v1612_v8 = vmul.f32 %v3735_v55, %v3735_v55  ;;  %v3739_v10 = vpop.f32.mrb[17].mxu0 }
 0x4e0   :  { %v1592_v19 = vadd.f32 %v3739_v10, %v3735_v55  ;;  %v1613_v54 = vmul.f32 %v3739_v10, %v3739_v10 }
 0x4e2   :  { %v1628_v11 = vadd.f32 %v1613_v54, %v1612_v8  ;;  %v3745_v33 = vpop.f32.mrb[18].mxu0 }
 0x4e3   :  { %v1616_v58 = vmul.f32 %v3745_v33, %v3745_v33  ;;  %v3749_v62 = vpop.f32.mrb[19].mxu0  ;;  %v3751_v17 = vpop.f32.mrb[16].mxu1 }
 0x4e4   :  { %v1597_v16 = vadd.f32 %v3749_v62, %v3745_v33  ;;  %v1617_v2 = vmul.f32 %v3749_v62, %v3749_v62  ;;  %v1593_v35 = vadd.f32 %v1592_v19, %v3751_v17  ;;  %v1614_v13 = vmul.f32 %v3751_v17, %v3751_v17  ;;  %v3760_v63 = vpop.f32.mrb[17].mxu1 }
 0x4e5   :  { %v1615_v59 = vmul.f32 %v3760_v63, %v3760_v63 }
 0x4e6   :  { %v1633_v22 = vadd.f32 %v1617_v2, %v1616_v58  ;;  %v1629_v61 = vadd.f32 %v1628_v11, %v1614_v13  ;;  %v1594_v15 = vadd.f32 %v1593_v35, %v3760_v63  ;;  %v3765_v60 = vpop.f32.mrb[20].mxu0  ;;  %v608_v13 = vld [vmem:[%s3988_s4 + $0x8] sm:$0xff] }
 0x4e7   :  { %v1620_v39 = vmul.f32 %v3765_v60, %v3765_v60  ;;  %v3769_v9 = vpop.f32.mrb[21].mxu0  ;;  %v3771_v28 = vpop.f32.mrb[18].mxu1 }
 0x4e8   :  { %v1602_v0 = vadd.f32 %v3769_v9, %v3765_v60  ;;  %v1621_v21 = vmul.f32 %v3769_v9, %v3769_v9  ;;  %v1598_v12 = vadd.f32 %v1597_v16, %v3771_v28  ;;  %v1618_v49 = vmul.f32 %v3771_v28, %v3771_v28  ;;  %v3780_v29 = vpop.f32.mrb[19].mxu1  ;;  %1595 = vadd.xlane.f32.xlu0 %v1594_v15  ;;  %v609_v15 = vld [vmem:[%s3988_s4 + $0x10] sm:$0xff] }
 0x4e9   :  { %v1619_v43 = vmul.f32 %v3780_v29, %v3780_v29  ;;  %v1630_v34 = vadd.f32 %v1629_v61, %v1615_v59  ;;  %v610_v59 = vld [vmem:[%s3988_s4 + $0x18] sm:$0xff]  ;;  %v607_v61 = vld [vmem:[%s3988_s4] sm:$0xff] }
 0x4ea   :  { %v1638_v32 = vadd.f32 %v1621_v21, %v1620_v39  ;;  %v1634_v45 = vadd.f32 %v1633_v22, %v1618_v49  ;;  %v1599_v6 = vadd.f32 %v1598_v12, %v3780_v29  ;;  %v3785_v48 = vpop.f32.mrb[22].mxu0  ;;  %v1733_v22 = vld [vmem:[%s3992_s8 + $0x8] sm:$0xff]  ;;  %v1732_v39 = vld [vmem:[%s3992_s8] sm:$0xff] }
 0x4eb   :  { %1631 = vadd.xlane.f32.xlu1 %v1630_v34  ;;  %v1624_v52 = vmul.f32 %v3785_v48, %v3785_v48  ;;  %v3789_v44 = vpop.f32.mrb[23].mxu0  ;;  %v3791_v37 = vpop.f32.mrb[20].mxu1 }
 0x4ec   :  { %v1607_v14 = vadd.f32 %v3789_v44, %v3785_v48  ;;  %v1625_v51 = vmul.f32 %v3789_v44, %v3789_v44  ;;  %v1603_v47 = vadd.f32 %v1602_v0, %v3791_v37  ;;  %v1622_v38 = vmul.f32 %v3791_v37, %v3791_v37  ;;  %v3800_v36 = vpop.f32.mrb[21].mxu1 }
 0x4ed   :  { %v1623_v57 = vmul.f32 %v3800_v36, %v3800_v36  ;;  %v1635_v56 = vadd.f32 %v1634_v45, %v1619_v43 }
 0x4ee   :  { %v1643_v7 = vadd.f32 %v1625_v51, %v1624_v52  ;;  %v1639_v26 = vadd.f32 %v1638_v32, %v1622_v38  ;;  %v1604_v30 = vadd.f32 %v1603_v47, %v3800_v36 }
 0x4ef   :  { %1636 = vadd.xlane.f32.xlu0 %v1635_v56  ;;  %1600 = vadd.xlane.f32.xlu1 %v1599_v6  ;;  %v3805_v20 = vpop.f32.mrb[22].mxu1 }
 0x4f0   :  { %v1608_v8 = vadd.f32 %v1607_v14, %v3805_v20  ;;  %v1626_v19 = vmul.f32 %v3805_v20, %v3805_v20  ;;  %v3810_v54 = vpop.f32.mrb[23].mxu1  ;;  %v1640_v11 = vadd.f32 %v1639_v26, %v1623_v57 }
 0x4f1   :  { %v1627_v58 = vmul.f32 %v3810_v54, %v3810_v54 }
 0x4f2   :  { %v1644_v16 = vadd.f32 %v1643_v7, %v1626_v19  ;;  %v1609_v2 = vadd.f32 %v1608_v8, %v3810_v54 }
 0x4f3   :  { %1641 = vadd.xlane.f32.xlu1 %v1640_v11  ;;  %1605 = vadd.xlane.f32.xlu0 %v1604_v30 }
 0x4f4   :  { %v1645_v35 = vadd.f32 %v1644_v16, %v1627_v58 }
 0x4f7   :  { %1610 = vadd.xlane.f32.xlu0 %v1609_v2 }
 0x4fb   :  { %1646 = vadd.xlane.f32.xlu0 %v1645_v35 }
 0x504   :  { %618 = vperm.xlu1 %2068, %v608_v13  }
 0x508   :  { %628 = vperm.xlu1 %2068, %v610_v59  }
 0x50c   :  { %1743 = vperm.xlu1 %2068, %v1733_v22  }
 0x511   :  { %613 = vperm.xlu0 %2069, %v607_v61  }
 0x515   :  { %623 = vperm.xlu0 %2069, %v609_v15  }
 0x519   :  { %1738 = vperm.xlu0 %2069, %v1732_v39  }
 0x575   :  { %v1596_v0 = vpop.xlane.xlu0 %1595 }
 0x576   :  { %v3833_v21 = vmul.f32 0.001953125, %v1596_v0 }
 0x578   :  { %v1632_v12 = vpop.xlane.xlu1 %1631  ;;  %v1656_v49 = vmul.f32 %v3833_v21, %v3833_v21  ;;  %v1680_v43 = vsub.f32 %v3735_v55, %v3833_v21  ;;  %v1681_v34 = vsub.f32 %v3739_v10, %v3833_v21  ;;  %v1682_v32 = vsub.f32 %v3751_v17, %v3833_v21 }
 0x579   :  { %v1652_v45 = vmul.f32 0.001953125, %v1632_v12  ;;  %v1683_v6 = vsub.f32 %v3760_v63, %v3833_v21 }
 0x57b   :  { %v1660_v52 = vsub.f32 %v1652_v45, %v1656_v49  ;;  %v1672_v45 = vld [vmem:[%s3991_s7] sm:$0xff] }
 0x57c   :  { %v1637_v14 = vpop.xlane.xlu0 %1636  ;;  %v1601_v51 = vpop.xlane.xlu1 %1600 }
 0x57d   :  { %v1664_v47 = vadd.f32 1e-05, %v1660_v52  ;;  %v3845_v38 = vmul.f32 0.001953125, %v1601_v51  ;;  %v1653_v57 = vmul.f32 0.001953125, %v1637_v14 }
 0x57f   :  { %2078 = vrsqrt.f32 %v1664_v47  ;;  %v1657_v56 = vmul.f32 %v3845_v38, %v3845_v38  ;;  %v1684_v7 = vsub.f32 %v3745_v33, %v3845_v38  ;;  %v1685_v26 = vsub.f32 %v3749_v62, %v3845_v38 }
 0x580   :  { %v1642_v30 = vpop.xlane.xlu1 %1641  ;;  %v1606_v8 = vpop.xlane.xlu0 %1605  ;;  %v1686_v19 = vsub.f32 %v3771_v28, %v3845_v38  ;;  %v1687_v11 = vsub.f32 %v3780_v29, %v3845_v38 }
 0x581   :  { %v1661_v58 = vsub.f32 %v1653_v57, %v1657_v56  ;;  %v3857_v16 = vmul.f32 0.001953125, %v1606_v8  ;;  %v1654_v2 = vmul.f32 0.001953125, %v1642_v30 }
 0x583   :  { %v1665_v35 = vadd.f32 1e-05, %v1661_v58  ;;  %v1658_v13 = vmul.f32 %v3857_v16, %v3857_v16  ;;  %v1688_v59 = vsub.f32 %v3765_v60, %v3857_v16  ;;  %v1689_v22 = vsub.f32 %v3769_v9, %v3857_v16 }
 0x584   :  { %v1611_v61 = vpop.xlane.xlu0 %1610  ;;  %v1690_v15 = vsub.f32 %v3791_v37, %v3857_v16 }
 0x585   :  { %2080 = vrsqrt.f32 %v1665_v35  ;;  %v1662_v0 = vsub.f32 %v1654_v2, %v1658_v13  ;;  %v3869_v12 = vmul.f32 0.001953125, %v1611_v61  ;;  %v1673_v35 = vld [vmem:[%s3991_s7 + $0x8] sm:$0xff] }
 0x587   :  { %v1666_v49 = vadd.f32 1e-05, %v1662_v0  ;;  %v1659_v56 = vmul.f32 %v3869_v12, %v3869_v12 }
 0x588   :  { %v1647_v52 = vpop.xlane.xlu0 %1646 }
 0x589   :  { %v2079_v57 = vpop.eup %2078  ;;  %2082 = vrsqrt.f32 %v1666_v49  ;;  %v1655_v30 = vmul.f32 0.001953125, %v1647_v52  ;;  %v1674_v49 = vld [vmem:[%s3991_s7 + $0x10] sm:$0xff] }
 0x58a   :  { %v1676_v8 = vmul.f32 %v2079_v57, %v1672_v45  ;;  %v1734_v45 = vld [vmem:[%s3992_s8 + $0x10] sm:$0xff] }
 0x58b   :  { %v1663_v2 = vsub.f32 %v1655_v30, %v1659_v56  ;;  %v1675_v56 = vld [vmem:[%s3991_s7 + $0x18] sm:$0xff]  ;;  %s2170_s7 = smov [#allocation7]  }
 0x58c   :  { %1698 = vperm.xlu1 %2068, %v1676_v8  }
 0x58d   :  { %v1667_v13 = vadd.f32 1e-05, %v1663_v2  ;;  %v1735_v2 = vld [vmem:[%s3992_s8 + $0x18] sm:$0xff]  ;;  %s1826_s8 = sshll.u32 %s2170_s7, 4  ;;  %s1827_s8 = int_to_ptr.vmem [resolvable:$true] %s1826_s8 }
 0x58e   :  { %s2130_s28 = scalar_lea.vmem %s1827_s8, 2048  ;;  %p2135_p3 = scmp.lt.s32.totalorder %s1827_s8, %s1827_s8 }
 0x58f   :  { %v2081_v61 = vpop.eup %2080  ;;  %2084 = vrsqrt.f32 %v1667_v13  ;;  %p2131_p2 = scmp.ne.s32.totalorder %s1827_s8, %s2130_s28  ;;  %p2136_p4 = scmp.lt.s32.totalorder %s2130_s28, %s2130_s28 }
 0x590   :  { %v1677_v0 = vmul.f32 %v2081_v61, %v1673_v35  ;;  %v619_v35 = vpop.permute.xlu1 %618  ;;  %v614_v61 = vpop.permute.xlu0 %613 }
 0x591   :  { %v633_v58 = vadd.f32 %v614_v61, %v3707_v1  ;;  %v634_v55 = vadd.f32 %v614_v61, %v3709_v3  ;;  %v635_v63 = vadd.f32 %v619_v35, %v3711_v53  ;;  %v636_v21 = vadd.f32 %v619_v35, %v3713_v31  ;;  %p2137_p5 = por %p2136_p4, %p2135_p3 }
 0x592   :  { %1703 = vperm.xlu0 %2069, %v1677_v0  }
 0x593   :  { %v2083_v52 = vpop.eup %2082  ;;  %p2138_p6 = pnand %p2137_p5, %p2131_p2 }
 0x594   :  { %v1678_v57 = vmul.f32 %v2083_v52, %v1674_v49  ;;  %v3899_v13 = vpop.permute.xlu1 %628  ;;  %v624_v49 = vpop.permute.xlu0 %623 }
 0x595   :  { %v642_v33 = vadd.f32 %v624_v49, %v3725_v25 }
 0x596   :  { %1708 = vperm.xlu1 %2068, %v1678_v57   ;;  %1748 = vperm.xlu0 %2069, %v1734_v45  }
 0x598   :  { %v1744_v0 = vpop.permute.xlu1 %1743 }
 0x599   :  { %v2085_v30 = vpop.eup %2084 }
 0x59a   :  { %v1679_v8 = vmul.f32 %v2085_v30, %v1675_v56 }
 0x59c   :  { %1713 = vperm.xlu1 %2068, %v1679_v8   ;;  %v631_v8 = vadd.f32 %v614_v61, %v3703_v40  ;;  %v637_v40 = vadd.f32 %v619_v35, %v3715_v18  ;;  %v639_v18 = vadd.f32 %v624_v49, %v3719_v24 }
 0x5a0   :  { %1753 = vperm.xlu1 %2068, %v1735_v2   ;;  %v632_v2 = vadd.f32 %v614_v61, %v3705_v27  ;;  %v638_v27 = vadd.f32 %v619_v35, %v3717_v4  ;;  %v640_v4 = vadd.f32 %v624_v49, %v3721_v50 }
 0x60b   :  { %v1699_v52 = vpop.permute.xlu1 %1698 }
 0x60c   :  { %v1716_v45 = vmul.f32 %v1699_v52, %v1680_v43  ;;  %v1717_v57 = vmul.f32 %v1699_v52, %v1681_v34  ;;  %v1718_v56 = vmul.f32 %v1699_v52, %v1682_v32  ;;  %v1719_v30 = vmul.f32 %v1699_v52, %v1683_v6  ;;  %v1739_v43 = vpop.permute.xlu0 %1738 }
 0x60e   :  { %v1756_v47 = vadd.f32 %v1739_v43, %v1716_v45  ;;  %v1757_v10 = vadd.f32 %v1739_v43, %v1717_v57  ;;  %v1758_v34 = vadd.f32 %v1739_v43, %v1718_v56  ;;  %v1759_v51 = vadd.f32 %v1739_v43, %v1719_v30 }
 0x60f   :  { %v4255_v43 = vsub.f32 %v3785_v48, %v3869_v12  ;;  %v645_v48 = vadd.f32 %v3899_v13, %v3731_v23 }
 0x610   :  { %v1772_v14 = vadd.f32 %v1756_v47, %v631_v8  ;;  %v1773_v17 = vadd.f32 %v1757_v10, %v632_v2  ;;  %v1774_v32 = vadd.f32 %v1758_v34, %v633_v58  ;;  %v1775_v39 = vadd.f32 %v1759_v51, %v634_v55 }
 0x611   :  { %v1704_v1 = vpop.permute.xlu0 %1703  ;;  %v4256_v34 = vsub.f32 %v3789_v44, %v3869_v12  ;;  %v646_v44 = vadd.f32 %v3899_v13, %v3733_v46 }
 0x612   :  { %v1788_v6 = vmax.f32 %v1772_v14, 0.0  ;;  %v1789_v3 = vmax.f32 %v1773_v17, 0.0  ;;  %v1790_v61 = vmax.f32 %v1774_v32, 0.0  ;;  %v1791_v52 = vmax.f32 %v1775_v39, 0.0 }
 0x613   :  { %v1720_v47 = vmul.f32 %v1704_v1, %v1684_v7  ;;  %v1721_v51 = vmul.f32 %v1704_v1, %v1685_v26  ;;  %v1722_v53 = vmul.f32 %v1704_v1, %v1686_v19  ;;  %v1723_v31 = vmul.f32 %v1704_v1, %v1687_v11 }
 0x614   :  { %v641_v39 = vadd.f32 %v624_v49, %v3723_v5  ;;  %1804 = vst [vmem:[#allocation7] sm:$0xff] %v1788_v6  ;;  %1805 = vst [vmem:[#allocation7 + $0x8] sm:$0xff] %v1789_v3  ;;  %v4254_v5 = vsub.f32 %v3800_v36, %v3857_v16  ;;  %v4257_v32 = vsub.f32 %v3805_v20, %v3869_v12 }
 0x615   :  { %1813 = vst [vmem:[#allocation7 + $0x40] sm:$0xff] %v1790_v61  ;;  %1814 = vst [vmem:[#allocation7 + $0x48] sm:$0xff] %v1791_v52  ;;  %v1760_v62 = vadd.f32 %v1744_v0, %v1720_v47  ;;  %v1761_v7 = vadd.f32 %v1744_v0, %v1721_v51  ;;  %v1762_v28 = vadd.f32 %v1744_v0, %v1722_v53  ;;  %v1709_v19 = vpop.permute.xlu1 %1708  ;;  %v1749_v35 = vpop.permute.xlu0 %1748 }
 0x616   :  { %v1763_v26 = vadd.f32 %v1744_v0, %v1723_v31  ;;  %v1724_v29 = vmul.f32 %v1709_v19, %v1688_v59  ;;  %v1725_v24 = vmul.f32 %v1709_v19, %v1689_v22  ;;  %v1726_v50 = vmul.f32 %v1709_v19, %v1690_v15 }
 0x617   :  { %v1727_v25 = vmul.f32 %v1709_v19, %v4254_v5  ;;  %v1776_v38 = vadd.f32 %v1760_v62, %v635_v63  ;;  %v1777_v11 = vadd.f32 %v1761_v7, %v636_v21  ;;  %v1778_v14 = vadd.f32 %v1762_v28, %v637_v40 }
 0x618   :  { %v1779_v58 = vadd.f32 %v1763_v26, %v638_v27  ;;  %v1764_v0 = vadd.f32 %v1749_v35, %v1724_v29  ;;  %v1765_v60 = vadd.f32 %v1749_v35, %v1725_v24  ;;  %v1766_v59 = vadd.f32 %v1749_v35, %v1726_v50 }
 0x619   :  { %v1767_v49 = vadd.f32 %v1749_v35, %v1727_v25  ;;  %v1792_v45 = vmax.f32 %v1776_v38, 0.0  ;;  %v1793_v9 = vmax.f32 %v1777_v11, 0.0  ;;  %v1794_v22 = vmax.f32 %v1778_v14, 0.0 }
 0x61a   :  { %v1795_v57 = vmax.f32 %v1779_v58, 0.0  ;;  %v1780_v56 = vadd.f32 %v1764_v0, %v639_v18  ;;  %v1781_v37 = vadd.f32 %v1765_v60, %v640_v4  ;;  %v1782_v15 = vadd.f32 %v1766_v59, %v641_v39 }
 0x61b   :  { %v1783_v30 = vadd.f32 %v1767_v49, %v642_v33  ;;  %1806 = vst [vmem:[#allocation7 + $0x10] sm:$0xff] %v1792_v45  ;;  %1807 = vst [vmem:[#allocation7 + $0x18] sm:$0xff] %v1793_v9  ;;  %v1714_v55 = vpop.permute.xlu1 %1713  ;;  %v4258_v21 = vsub.f32 %v3810_v54, %v3869_v12  ;;  %v643_v27 = vadd.f32 %v3899_v13, %v3727_v41 }
 0x61c   :  { %1815 = vst [vmem:[#allocation7 + $0x50] sm:$0xff] %v1794_v22  ;;  %1816 = vst [vmem:[#allocation7 + $0x58] sm:$0xff] %v1795_v57  ;;  %v1796_v36 = vmax.f32 %v1780_v56, 0.0  ;;  %v1797_v16 = vmax.f32 %v1781_v37, 0.0  ;;  %v1798_v8 = vmax.f32 %v1782_v15, 0.0  ;;  %v1728_v10 = vmul.f32 %v1714_v55, %v4255_v43 }
 0x61d   :  { %v1799_v2 = vmax.f32 %v1783_v30, 0.0  ;;  %v1729_v17 = vmul.f32 %v1714_v55, %v4256_v34  ;;  %v1730_v63 = vmul.f32 %v1714_v55, %v4257_v32  ;;  %v1731_v40 = vmul.f32 %v1714_v55, %v4258_v21 }
 0x61e   :  { %1808 = vst [vmem:[#allocation7 + $0x20] sm:$0xff] %v1796_v36  ;;  %1809 = vst [vmem:[#allocation7 + $0x28] sm:$0xff] %v1797_v16  ;;  %v644_v1 = vadd.f32 %v3899_v13, %v3729_v42 }
 0x61f   :  { %1817 = vst [vmem:[#allocation7 + $0x60] sm:$0xff] %v1798_v8  ;;  %1818 = vst [vmem:[#allocation7 + $0x68] sm:$0xff] %v1799_v2  ;;  %v1754_v6 = vpop.permute.xlu1 %1753 }
 0x620   :  { %v1768_v3 = vadd.f32 %v1754_v6, %v1728_v10  ;;  %v1769_v20 = vadd.f32 %v1754_v6, %v1729_v17  ;;  %v1770_v61 = vadd.f32 %v1754_v6, %v1730_v63  ;;  %v1771_v52 = vadd.f32 %v1754_v6, %v1731_v40 }
 0x622   :  { %v1784_v54 = vadd.f32 %v1768_v3, %v643_v27  ;;  %v1785_v12 = vadd.f32 %v1769_v20, %v644_v1  ;;  %v1786_v47 = vadd.f32 %v1770_v61, %v645_v48  ;;  %v1787_v41 = vadd.f32 %v1771_v52, %v646_v44 }
 0x624   :  { %v1800_v51 = vmax.f32 %v1784_v54, 0.0  ;;  %v1801_v53 = vmax.f32 %v1785_v12, 0.0  ;;  %v1802_v42 = vmax.f32 %v1786_v47, 0.0  ;;  %v1803_v31 = vmax.f32 %v1787_v41, 0.0 }
 0x626   :  { %1810 = vst [vmem:[#allocation7 + $0x30] sm:$0xff] %v1800_v51  ;;  %1811 = vst [vmem:[#allocation7 + $0x38] sm:$0xff] %v1801_v53 }
 0x627   :  { %1819 = vst [vmem:[#allocation7 + $0x70] sm:$0xff] %v1802_v42  ;;  %1820 = vst [vmem:[#allocation7 + $0x78] sm:$0xff] %v1803_v31 }
 0x628   :  { %2141 = shalt.err (!%p2138_p6)
}
 0x629   :  { %s2142_s2 = scalar_lea.hbm %s3993_s9, 2048 }
 0x62a   :  { %p2143_p7 = scmp.ne.s32.totalorder %s3993_s9, %s2142_s2  ;;  %p2146_p8 = scmp.lt.u32.totalorder %s2142_s2, %s3993_s9 }
 0x62c   :  { %p2148_p9 = pnand %p2146_p8, %p2143_p7 }
 0x62e   :  { %2151 = shalt.err (!%p2148_p9)
}
 0x62f   :  { %1832 = dma.vmem_to_hbm [thread:$0]  %s1827_s8, 2048, %s3993_s9, [#allocation4], %s2159_s19, %s2159_s19, %s2160_s20  }
 0x630   :  { %2156 = dma.done.wait [#allocation4], 2048  }
 0x631   :  { %2157 = vsyncadd [#allocation4], 4294965248 }
 0x632   :  { %1836 = vsyncpa [#allocation3], 1 }
 0x633   :  { %1837 = vsyncpa [#allocation6], 1 }
 0x634   :  { %1838 = vsyncpa [#allocation4], 1 }

</bundles_post_ra>
